<compile_context>
chip_gen: v6e
topology: v6e:2x2x1
jax: 0.10.0
libtpu: 0.0.40
codegen_flags: <defaults>
</compile_context>

<pallas_src>
import functools

import numpy as np

import jax
import jax.numpy as jnp
from jax.experimental import pallas as pl
from jax.experimental.pallas import tpu as pltpu

BN_EPS = 1e-5


# ---------------------------------------------------------------------------
# Fused BoostBlock kernel
# ---------------------------------------------------------------------------
def _boost_block_kernel(x_ref, bn_ref, w_ref, o_ref, *, b_tile, H, W, c_in,
                        n_branch, plan, compute_dtype):
    """One grid step = b_tile images; all branches/blocks/layers fused."""

    def bn_relu(a, layer):
        li, L = layer["bn"], layer["lane_in"]
        scale = bn_ref[2 * li:2 * li + 1, 0:L]          # (1, L) f32, lane-periodic
        bias = bn_ref[2 * li + 1:2 * li + 2, 0:L]
        return jnp.maximum(a * scale + bias, 0.0)       # f32 on the VPU

    def even_rows(a):
        # rows 0,2,4,... (per-image even rows; H_in is even).  Layout-friendly:
        # pair consecutive rows into lanes, keep the first half.
        m, l = a.shape
        return a.reshape(m // 2, 2 * l)[:, 0:l]

    def shift_rows(a, h_img, up):
        # up=False: out[r] = a[r-1]  (zero at each image's first row)
        # up=True : out[r] = a[r+1]  (zero at each image's last row)
        m, l = a.shape
        z = jnp.zeros((1, l), a.dtype)
        if up:
            s = jnp.concatenate([a[1:m, :], z], axis=0)
        else:
            s = jnp.concatenate([z, a[0:m - 1, :]], axis=0)
        if m > h_img:   # several images stacked along rows: zero the seams
            r = jax.lax.broadcasted_iota(jnp.int32, (m, l), 0)
            edge = (r % h_img) == (h_img - 1 if up else 0)
            s = jnp.where(edge, 0.0, s)
        return s

    def matmul(a, mat_idx, lane_in, lane_out):
        wm = w_ref[mat_idx, 0:lane_in, 0:lane_out]       # bf16 banded weight
        return jnp.dot(a.astype(compute_dtype), wm,
                       preferred_element_type=jnp.float32)

    def conv_layer(a, layer):
        """Fused BN->ReLU->KxK conv over all branches.
        a: (b_tile*H_in, lane_in) f32 slab, branch-major lane layout (b, w, c).
        Returns (b_tile*H_out, lane_out) f32 slab."""
        Li, Lo = layer["lane_in"], layer["lane_out"]
        h_in, stride = layer["h_in"], layer["stride"]
        a = bn_relu(a, layer)
        if layer["k"] == 1:
            if stride == 2:
                a = even_rows(a)                         # subsample before matmul
            return matmul(a, layer["w"][0], Li, Lo)
        # 3x3: kw taps + W zero-padding live inside the banded weights;
        # kh taps are two row shifts of the lane-dense slab.
        taps = (shift_rows(a, h_in, up=False), a, shift_rows(a, h_in, up=True))
        if stride == 2:
            taps = tuple(even_rows(t) for t in taps)     # subsample before matmul
        acc = matmul(taps[0], layer["w"][0], Li, Lo)
        acc = acc + matmul(taps[1], layer["w"][1], Li, Lo)
        acc = acc + matmul(taps[2], layer["w"][2], Li, Lo)
        return acc

    # ---- fused forward ----
    x0 = x_ref[...].reshape(b_tile * H, W * c_in)        # lane-dense input slab
    # replicate x across branches (branch-major lane layout b, w, c)
    xr = x0 if n_branch == 1 else jnp.concatenate([x0] * n_branch, axis=-1)

    # NOTE: loops below are over a small, statically-known layer count
    # (branches are fused, so it is N*l + identities, not C*N*l).
    t = xr
    for blk in plan["blocks"]:
        u = t
        for layer in blk["convs"]:
            u = conv_layer(u, layer)
        if blk["identity"] is not None:
            t = conv_layer(t, blk["identity"]) + u       # fused residual add
        else:
            t = t + u

    # sum the per-branch channel groups (vreg-aligned lane slices when
    # W_out*c_out is a multiple of 128, as in the demo).
    ol = plan["out_lane"]
    y = t[:, 0:ol]
    for b in range(1, n_branch):
        y = y + t[:, b * ol:(b + 1) * ol]

    xi = conv_layer(x0, plan["identity"]) if plan["identity"] is not None else x0
    out = xi + y
    # lane-dense store: last dim W_out*c_out (128 in the demo) -> unmasked vst
    o_ref[...] = out.reshape(b_tile, plan["h_out"], ol).astype(o_ref.dtype)


# ---------------------------------------------------------------------------
# Parameter flattening: fuse branches, fold BN, build banded weight matrices
# ---------------------------------------------------------------------------
def _flatten_boost_params(params, H, W, compute_dtype):
    boosts = params["boosts"]
    n_branch = len(boosts)
    n_blocks = len(boosts[0])

    bn_rows, w_mats = [], []
    stats = {"flops": 0}

    def add_fused_layer(branch_layers, W_in, H_in):
        """branch_layers: one {'p': conv params, 's': stride} per fused branch."""
        stride = branch_layers[0]["s"]
        w0 = np.asarray(branch_layers[0]["p"]["w"])      # (cout, cin, K, K)
        cout, cin, K, _ = w0.shape
        assert H_in % stride == 0 and W_in % stride == 0, "odd spatial + stride 2"
        W_out, H_out = W_in // stride, H_in // stride
        nb = len(branch_layers)
        lane_in, lane_out = nb * W_in * cin, nb * W_out * cout

        # BN folded to per-lane scale/bias (same f32 expression as the ref).
        scales, biases = [], []
        for bl in branch_layers:
            p = bl["p"]
            sc = p["gamma"] / jnp.sqrt(p["var"] + BN_EPS)
            bi = p["beta"] - p["mean"] * sc
            scales.append(np.tile(np.asarray(sc, np.float32), W_in))
            biases.append(np.tile(np.asarray(bi, np.float32), W_in))
        bn_idx = len(bn_rows) // 2
        bn_rows.append(np.concatenate(scales))
        bn_rows.append(np.concatenate(biases))

        # Banded (across W, incl. stride + zero padding), block-diagonal
        # (across branches) weight matrices, one per kh tap.
        P = (K - 1) // 2
        w_idx = []
        for kh in range(K):
            M = np.zeros((lane_in, lane_out), np.float32)
            for b, bl in enumerate(branch_layers):
                wt = np.transpose(np.asarray(bl["p"]["w"], np.float32),
                                  (2, 3, 1, 0))          # (K, K, cin, cout)
                r0, c0 = b * W_in * cin, b * W_out * cout
                for wo in range(W_out):
                    for kw in range(K):
                        wi = stride * wo + kw - P
                        if 0 <= wi < W_in:
                            M[r0 + wi * cin:r0 + (wi + 1) * cin,
                              c0 + wo * cout:c0 + (wo + 1) * cout] = wt[kh, kw]
            w_idx.append(len(w_mats))
            w_mats.append(M)
        stats["flops"] += 2 * K * H_out * lane_in * lane_out   # per image
        return ({"k": K, "stride": stride, "h_in": H_in,
                 "lane_in": lane_in, "lane_out": lane_out,
                 "bn": bn_idx, "w": tuple(w_idx)},
                W_out, H_out)

    plan_blocks = []
    W_cur, H_cur = W, H
    for n in range(n_blocks):
        blk_W, blk_H = W_cur, H_cur
        convs = []
        for i in range(len(boosts[0][n]["convs"])):
            layer, W_cur, H_cur = add_fused_layer(
                [boosts[b][n]["convs"][i] for b in range(n_branch)], W_cur, H_cur)
            convs.append(layer)
        ident = None
        if boosts[0][n]["identity"] is not None:
            ident, _, _ = add_fused_layer(
                [boosts[b][n]["identity"] for b in range(n_branch)], blk_W, blk_H)
        plan_blocks.append({"convs": convs, "identity": ident})

    trunk = None
    if params["identity"] is not None:
        trunk, _, _ = add_fused_layer([params["identity"]], W, H)

    c_out = int(np.asarray(boosts[0][0]["convs"][0]["p"]["w"]).shape[0])
    plan = {"blocks": plan_blocks, "identity": trunk,
            "h_out": H_cur, "w_out": W_cur, "out_lane": W_cur * c_out,
            "flops_per_image": stats["flops"]}

    # Pack everything into two refs, padded to 128-aligned lanes so the weight
    # DMA tiles are unmasked and fetched once (constant index_map).
    def rup(v, m):
        return ((v + m - 1) // m) * m

    lane_in_pad = rup(max(m.shape[0] for m in w_mats), 128)
    lane_out_pad = rup(max(m.shape[1] for m in w_mats), 128)
    n_bn = rup(len(bn_rows), 8)
    bn_packed = np.zeros((n_bn, lane_in_pad), np.float32)
    for i, r in enumerate(bn_rows):
        bn_packed[i, :r.shape[0]] = r
    w_packed = np.zeros((len(w_mats), lane_in_pad, lane_out_pad), np.float32)
    for i, m in enumerate(w_mats):
        w_packed[i, :m.shape[0], :m.shape[1]] = m

    return (jnp.asarray(bn_packed),
            jnp.asarray(w_packed).astype(compute_dtype),
            plan, n_branch)


def _pick_batch_tile(batch, target=8):
    """Largest divisor of batch that is <= target while keeping >= 2 grid steps
    (v7x has 2 TensorCores; a size-1 'parallel' grid leaves one idle)."""
    best = 1
    for bt in range(1, min(batch, target) + 1):
        if batch % bt == 0 and (batch // bt >= 2 or batch == 1):
            best = bt
    return best


def boost_block_pallas(x_nhwc, params, *, compute_dtype=jnp.bfloat16,
                       out_dtype=jnp.float32):
    """x_nhwc: (N, H, W, c_in) f32.  Returns (N, H_out, W_out, c_out)."""
    batch, H, W, c_in = x_nhwc.shape
    bn_packed, w_packed, plan, n_branch = _flatten_boost_params(
        params, H, W, compute_dtype)
    Ho, Wo, out_lane = plan["h_out"], plan["w_out"], plan["out_lane"]
    c_out = out_lane // Wo

    b_tile = _pick_batch_tile(batch)
    grid = (batch // b_tile,)

    x_slab = x_nhwc.reshape(batch, H, W * c_in)          # lane-dense input

    kern = functools.partial(
        _boost_block_kernel, b_tile=b_tile, H=H, W=W, c_in=c_in,
        n_branch=n_branch, plan=plan, compute_dtype=compute_dtype)

    cost = pl.CostEstimate(
        flops=int(batch * plan["flops_per_image"]),
        transcendentals=0,
        bytes_accessed=int(x_slab.size * 4
                           + batch * Ho * out_lane * np.dtype(out_dtype).itemsize
                           + bn_packed.size * 4 + w_packed.size * 2))

    out = pl.pallas_call(
        kern,
        out_shape=jax.ShapeDtypeStruct((batch, Ho, out_lane), out_dtype),
        grid=grid,
        in_specs=[
            pl.BlockSpec((b_tile, H, W * c_in), lambda n: (n, 0, 0)),
            pl.BlockSpec(bn_packed.shape, lambda n: (0, 0)),
            pl.BlockSpec(w_packed.shape, lambda n: (0, 0, 0)),
        ],
        out_specs=pl.BlockSpec((b_tile, Ho, out_lane), lambda n: (n, 0, 0)),
        compiler_params=pltpu.CompilerParams(
            dimension_semantics=("parallel",),
            vmem_limit_bytes=32 * 1024 * 1024),
        cost_estimate=cost,
    )(x_slab, bn_packed, w_packed)
    return out.reshape(batch, Ho, Wo, c_out)


# ---------------------------------------------------------------------------
# Deterministic parameter init (mirrors the PyTorch module structure)
# ---------------------------------------------------------------------------
def init_bn_relu_conv_params(key, c_in, c_out, ksize):
    k1, k2, k3, k4, k5 = jax.random.split(key, 5)
    fan_in = c_in * ksize * ksize
    return {
        "gamma": 1.0 + 0.1 * jax.random.normal(k1, (c_in,), jnp.float32),
        "beta": 0.1 * jax.random.normal(k2, (c_in,), jnp.float32),
        "mean": 0.1 * jax.random.normal(k3, (c_in,), jnp.float32),
        "var": 1.0 + 0.2 * jax.random.uniform(k4, (c_in,), jnp.float32),
        "w": jax.random.normal(k5, (c_out, c_in, ksize, ksize), jnp.float32)
             * (2.0 / fan_in) ** 0.5,
    }


def init_basic_block(key, c_in, c_out, l, is_downsample):
    keys = jax.random.split(key, l + 1)
    stride = 2 if is_downsample else 1
    convs = []
    for i in range(l):
        c_x = c_in if i == 0 else c_out
        s = stride if i == 0 else 1
        convs.append({"p": init_bn_relu_conv_params(keys[i], c_x, c_out, 3), "s": s})
    identity = None
    if is_downsample or c_in != c_out:
        identity = {"p": init_bn_relu_conv_params(keys[l], c_in, c_out, 1), "s": stride}
    return {"convs": convs, "identity": identity}


def init_boost_block(key, c_in, c_out, C, N, l, is_downsample):
    keys = jax.random.split(key, C + 1)
    boosts = []
    for ci in range(C):
        bkeys = jax.random.split(keys[ci], N)
        blocks = []
        for ni in range(N):
            if ni == 0:
                blocks.append(init_basic_block(bkeys[ni], c_in, c_out, l, is_downsample))
            else:
                blocks.append(init_basic_block(bkeys[ni], c_out, c_out, l, False))
        boosts.append(blocks)
    identity = None
    stride = 2 if is_downsample else 1
    if is_downsample or c_in != c_out:
        identity = {"p": init_bn_relu_conv_params(keys[C], c_in, c_out, 1), "s": stride}
    return {"boosts": boosts, "identity": identity}


# ---------------------------------------------------------------------------
# Pure-JAX reference (for correctness check)
# ---------------------------------------------------------------------------
def ref_bn_relu_conv(x, p, stride, compute_dtype):
    scale = p["gamma"] / jnp.sqrt(p["var"] + BN_EPS)
    bias = p["beta"] - p["mean"] * scale
    a = jnp.maximum(x * scale + bias, 0.0)
    w = p["w"]
    K = w.shape[-1]
    pad = (K - 1) // 2
    return jax.lax.conv_general_dilated(
        a.astype(compute_dtype),
        jnp.transpose(w, (2, 3, 1, 0)).astype(compute_dtype),
        window_strides=(stride, stride),
        padding=[(pad, pad), (pad, pad)],
        dimension_numbers=("NHWC", "HWIO", "NHWC"),
        preferred_element_type=jnp.float32)


def ref_boost_block(x, params, compute_dtype):
    def conv(v, c):
        return ref_bn_relu_conv(v, c["p"], c["s"], compute_dtype)

    def basic(v, bb):
        y = v
        for c in bb["convs"]:
            y = conv(y, c)
        if bb["identity"] is not None:
            v = conv(v, bb["identity"])
        return v + y

    y = None
    for blocks in params["boosts"]:
        t = x
        for bb in blocks:
            t = basic(t, bb)
        y = t if y is None else y + t
    if params["identity"] is not None:
        x = conv(x, params["identity"])
    return x + y


# ---------------------------------------------------------------------------
if __name__ == "__main__":
    def run_case(name, c_in, c_out, C, N_blocks, l, is_downsample, batch,
                 spatial, key):
        xkey, wkey = jax.random.split(key)
        x_nchw = jax.random.normal(xkey, (batch, c_in, spatial, spatial),
                                   jnp.float32)
        params = init_boost_block(wkey, c_in, c_out, C, N_blocks, l,
                                  is_downsample)
        x_nhwc = jnp.transpose(x_nchw, (0, 2, 3, 1))

        out_nhwc = jax.block_until_ready(boost_block_pallas(x_nhwc, params))
        out_nchw = jnp.transpose(out_nhwc, (0, 3, 1, 2))

        # Reference with matching (bf16) matmul operand dtype: tight check.
        ref_bf16 = jnp.transpose(
            ref_boost_block(x_nhwc, params, jnp.bfloat16), (0, 3, 1, 2))
        # Full-f32 reference: loose sanity check (bf16 operand rounding only).
        ref_f32 = jnp.transpose(
            ref_boost_block(x_nhwc, params, jnp.float32), (0, 3, 1, 2))

        s_out = spatial // (2 if is_downsample else 1)
        assert out_nchw.shape == (batch, c_out, s_out, s_out), (name, out_nchw.shape)
        assert jnp.allclose(out_nchw, ref_bf16, rtol=2e-2, atol=2e-2), (
            name, float(jnp.max(jnp.abs(out_nchw - ref_bf16))))
        assert float(jnp.max(jnp.abs(out_nchw - ref_f32))) < 0.5, name

    key = jax.random.PRNGKey(0)
    k1, k2 = jax.random.split(key)
    # BoostBlock(c_in=4, c_out=8, C=2, N=1, l=2, is_downsample=False)
    run_case("base", 4, 8, 2, 1, 2, False, batch=2, spatial=16, key=k1)
    # stride-2 / is_downsample=True path (was flagged as untested)
    run_case("downsample", 4, 8, 2, 1, 2, True, batch=2, spatial=16, key=k2)
    print("KERNEL_OK")
</pallas_src>

<mosaic_0001>
module attributes {stable_mosaic.version = 11 : i64} {
  func.func @_boost_block_kernel(%arg0: i32, %arg1: memref<1x16x64xf32, #tpu.memory_space<vmem>>, %arg2: memref<8x256xf32, #tpu.memory_space<vmem>>, %arg3: memref<8x256x256xbf16, #tpu.memory_space<vmem>>, %arg4: memref<1x16x128xf32, #tpu.memory_space<vmem>>) attributes {dimension_semantics = [#tpu.dimension_semantics<parallel>], iteration_bounds = array<i64: 2>, scalar_prefetch = 0 : i64, scratch_operands = 0 : i64, tpu.core_type = #tpu.core_type<tc>, window_params = [{transform_indices = @transform_0, window_bounds = array<i64: 1, 16, 64>}, {pipeline_mode = #tpu.pipeline_mode<synchronous>, transform_indices = @transform_1, window_bounds = array<i64: 8, 256>}, {pipeline_mode = #tpu.pipeline_mode<synchronous>, transform_indices = @transform_2, window_bounds = array<i64: 8, 256, 256>}, {transform_indices = @transform_3, window_bounds = array<i64: 1, 16, 128>}]} {
    %c0 = arith.constant 0 : index
    %c0_0 = arith.constant 0 : index
    %c0_1 = arith.constant 0 : index
    %0 = vector.load %arg1[%c0, %c0_0, %c0_1] : memref<1x16x64xf32, #tpu.memory_space<vmem>>, vector<1x16x64xf32>
    %1 = vector.shape_cast %0 : vector<1x16x64xf32> to vector<16x64xf32>
    %2 = tpu.concatenate %1, %1 in 1 : vector<16x64xf32>, vector<16x64xf32> -> vector<16x128xf32>
    %c0_2 = arith.constant 0 : index
    %c0_3 = arith.constant 0 : index
    %3 = vector.load %arg2[%c0_2, %c0_3] : memref<8x256xf32, #tpu.memory_space<vmem>>, vector<1x128xf32>
    %c1 = arith.constant 1 : index
    %c0_4 = arith.constant 0 : index
    %4 = vector.load %arg2[%c1, %c0_4] : memref<8x256xf32, #tpu.memory_space<vmem>>, vector<1x128xf32>
    %5 = vector.broadcast %3 : vector<1x128xf32> to vector<16x128xf32>
    %6 = arith.mulf %2, %5 : vector<16x128xf32>
    %7 = vector.broadcast %4 : vector<1x128xf32> to vector<16x128xf32>
    %8 = arith.addf %6, %7 : vector<16x128xf32>
    %cst = arith.constant 0.000000e+00 : f32
    %9 = vector.broadcast %cst : f32 to vector<16x128xf32>
    %10 = arith.maximumf %8, %9 : vector<16x128xf32>
    %cst_5 = arith.constant 0.000000e+00 : f32
    %11 = vector.broadcast %cst_5 : f32 to vector<1x128xf32>
    %12 = vector.extract_strided_slice %10 {offsets = [0, 0], sizes = [15, 128], strides = [1, 1]} : vector<16x128xf32> to vector<15x128xf32>
    %13 = tpu.concatenate %11, %12 in 0 : vector<1x128xf32>, vector<15x128xf32> -> vector<16x128xf32>
    %cst_6 = arith.constant 0.000000e+00 : f32
    %14 = vector.broadcast %cst_6 : f32 to vector<1x128xf32>
    %15 = vector.extract_strided_slice %10 {offsets = [1, 0], sizes = [15, 128], strides = [1, 1]} : vector<16x128xf32> to vector<15x128xf32>
    %16 = tpu.concatenate %15, %14 in 0 : vector<15x128xf32>, vector<1x128xf32> -> vector<16x128xf32>
    %c0_7 = arith.constant 0 : index
    %c0_8 = arith.constant 0 : index
    %c0_9 = arith.constant 0 : index
    %17 = vector.load %arg3[%c0_7, %c0_8, %c0_9] : memref<8x256x256xbf16, #tpu.memory_space<vmem>>, vector<1x128x256xbf16>
    %18 = vector.shape_cast %17 : vector<1x128x256xbf16> to vector<128x256xbf16>
    %19 = arith.truncf %13 : vector<16x128xf32> to vector<16x128xbf16>
    %cst_10 = arith.constant dense<0.000000e+00> : vector<16x256xf32>
    %20 = tpu.matmul %19, %18, %cst_10 {dimension_numbers = #tpu.dot_dimension_numbers<[1], [0], [0], [1], [0, 0, 1, 1], [], []>} : vector<16x128xbf16>, vector<128x256xbf16>, vector<16x256xf32> -> vector<16x256xf32>
    %c1_11 = arith.constant 1 : index
    %c0_12 = arith.constant 0 : index
    %c0_13 = arith.constant 0 : index
    %21 = vector.load %arg3[%c1_11, %c0_12, %c0_13] : memref<8x256x256xbf16, #tpu.memory_space<vmem>>, vector<1x128x256xbf16>
    %22 = vector.shape_cast %21 : vector<1x128x256xbf16> to vector<128x256xbf16>
    %23 = arith.truncf %10 : vector<16x128xf32> to vector<16x128xbf16>
    %cst_14 = arith.constant dense<0.000000e+00> : vector<16x256xf32>
    %24 = tpu.matmul %23, %22, %cst_14 {dimension_numbers = #tpu.dot_dimension_numbers<[1], [0], [0], [1], [0, 0, 1, 1], [], []>} : vector<16x128xbf16>, vector<128x256xbf16>, vector<16x256xf32> -> vector<16x256xf32>
    %25 = arith.addf %20, %24 : vector<16x256xf32>
    %c2 = arith.constant 2 : index
    %c0_15 = arith.constant 0 : index
    %c0_16 = arith.constant 0 : index
    %26 = vector.load %arg3[%c2, %c0_15, %c0_16] : memref<8x256x256xbf16, #tpu.memory_space<vmem>>, vector<1x128x256xbf16>
    %27 = vector.shape_cast %26 : vector<1x128x256xbf16> to vector<128x256xbf16>
    %28 = arith.truncf %16 : vector<16x128xf32> to vector<16x128xbf16>
    %cst_17 = arith.constant dense<0.000000e+00> : vector<16x256xf32>
    %29 = tpu.matmul %28, %27, %cst_17 {dimension_numbers = #tpu.dot_dimension_numbers<[1], [0], [0], [1], [0, 0, 1, 1], [], []>} : vector<16x128xbf16>, vector<128x256xbf16>, vector<16x256xf32> -> vector<16x256xf32>
    %30 = arith.addf %25, %29 : vector<16x256xf32>
    %c2_18 = arith.constant 2 : index
    %c0_19 = arith.constant 0 : index
    %31 = vector.load %arg2[%c2_18, %c0_19] : memref<8x256xf32, #tpu.memory_space<vmem>>, vector<1x256xf32>
    %c3 = arith.constant 3 : index
    %c0_20 = arith.constant 0 : index
    %32 = vector.load %arg2[%c3, %c0_20] : memref<8x256xf32, #tpu.memory_space<vmem>>, vector<1x256xf32>
    %33 = vector.broadcast %31 : vector<1x256xf32> to vector<16x256xf32>
    %34 = arith.mulf %30, %33 : vector<16x256xf32>
    %35 = vector.broadcast %32 : vector<1x256xf32> to vector<16x256xf32>
    %36 = arith.addf %34, %35 : vector<16x256xf32>
    %cst_21 = arith.constant 0.000000e+00 : f32
    %37 = vector.broadcast %cst_21 : f32 to vector<16x256xf32>
    %38 = arith.maximumf %36, %37 : vector<16x256xf32>
    %cst_22 = arith.constant 0.000000e+00 : f32
    %39 = vector.broadcast %cst_22 : f32 to vector<1x256xf32>
    %40 = vector.extract_strided_slice %38 {offsets = [0, 0], sizes = [15, 256], strides = [1, 1]} : vector<16x256xf32> to vector<15x256xf32>
    %41 = tpu.concatenate %39, %40 in 0 : vector<1x256xf32>, vector<15x256xf32> -> vector<16x256xf32>
    %cst_23 = arith.constant 0.000000e+00 : f32
    %42 = vector.broadcast %cst_23 : f32 to vector<1x256xf32>
    %43 = vector.extract_strided_slice %38 {offsets = [1, 0], sizes = [15, 256], strides = [1, 1]} : vector<16x256xf32> to vector<15x256xf32>
    %44 = tpu.concatenate %43, %42 in 0 : vector<15x256xf32>, vector<1x256xf32> -> vector<16x256xf32>
    %c3_24 = arith.constant 3 : index
    %c0_25 = arith.constant 0 : index
    %c0_26 = arith.constant 0 : index
    %45 = vector.load %arg3[%c3_24, %c0_25, %c0_26] : memref<8x256x256xbf16, #tpu.memory_space<vmem>>, vector<1x256x256xbf16>
    %46 = vector.shape_cast %45 : vector<1x256x256xbf16> to vector<256x256xbf16>
    %47 = arith.truncf %41 : vector<16x256xf32> to vector<16x256xbf16>
    %cst_27 = arith.constant dense<0.000000e+00> : vector<16x256xf32>
    %48 = tpu.matmul %47, %46, %cst_27 {dimension_numbers = #tpu.dot_dimension_numbers<[1], [0], [0], [1], [0, 0, 1, 1], [], []>} : vector<16x256xbf16>, vector<256x256xbf16>, vector<16x256xf32> -> vector<16x256xf32>
    %c4 = arith.constant 4 : index
    %c0_28 = arith.constant 0 : index
    %c0_29 = arith.constant 0 : index
    %49 = vector.load %arg3[%c4, %c0_28, %c0_29] : memref<8x256x256xbf16, #tpu.memory_space<vmem>>, vector<1x256x256xbf16>
    %50 = vector.shape_cast %49 : vector<1x256x256xbf16> to vector<256x256xbf16>
    %51 = arith.truncf %38 : vector<16x256xf32> to vector<16x256xbf16>
    %cst_30 = arith.constant dense<0.000000e+00> : vector<16x256xf32>
    %52 = tpu.matmul %51, %50, %cst_30 {dimension_numbers = #tpu.dot_dimension_numbers<[1], [0], [0], [1], [0, 0, 1, 1], [], []>} : vector<16x256xbf16>, vector<256x256xbf16>, vector<16x256xf32> -> vector<16x256xf32>
    %53 = arith.addf %48, %52 : vector<16x256xf32>
    %c5 = arith.constant 5 : index
    %c0_31 = arith.constant 0 : index
    %c0_32 = arith.constant 0 : index
    %54 = vector.load %arg3[%c5, %c0_31, %c0_32] : memref<8x256x256xbf16, #tpu.memory_space<vmem>>, vector<1x256x256xbf16>
    %55 = vector.shape_cast %54 : vector<1x256x256xbf16> to vector<256x256xbf16>
    %56 = arith.truncf %44 : vector<16x256xf32> to vector<16x256xbf16>
    %cst_33 = arith.constant dense<0.000000e+00> : vector<16x256xf32>
    %57 = tpu.matmul %56, %55, %cst_33 {dimension_numbers = #tpu.dot_dimension_numbers<[1], [0], [0], [1], [0, 0, 1, 1], [], []>} : vector<16x256xbf16>, vector<256x256xbf16>, vector<16x256xf32> -> vector<16x256xf32>
    %58 = arith.addf %53, %57 : vector<16x256xf32>
    %c4_34 = arith.constant 4 : index
    %c0_35 = arith.constant 0 : index
    %59 = vector.load %arg2[%c4_34, %c0_35] : memref<8x256xf32, #tpu.memory_space<vmem>>, vector<1x128xf32>
    %c5_36 = arith.constant 5 : index
    %c0_37 = arith.constant 0 : index
    %60 = vector.load %arg2[%c5_36, %c0_37] : memref<8x256xf32, #tpu.memory_space<vmem>>, vector<1x128xf32>
    %61 = vector.broadcast %59 : vector<1x128xf32> to vector<16x128xf32>
    %62 = arith.mulf %2, %61 : vector<16x128xf32>
    %63 = vector.broadcast %60 : vector<1x128xf32> to vector<16x128xf32>
    %64 = arith.addf %62, %63 : vector<16x128xf32>
    %cst_38 = arith.constant 0.000000e+00 : f32
    %65 = vector.broadcast %cst_38 : f32 to vector<16x128xf32>
    %66 = arith.maximumf %64, %65 : vector<16x128xf32>
    %c6 = arith.constant 6 : index
    %c0_39 = arith.constant 0 : index
    %c0_40 = arith.constant 0 : index
    %67 = vector.load %arg3[%c6, %c0_39, %c0_40] : memref<8x256x256xbf16, #tpu.memory_space<vmem>>, vector<1x128x256xbf16>
    %68 = vector.shape_cast %67 : vector<1x128x256xbf16> to vector<128x256xbf16>
    %69 = arith.truncf %66 : vector<16x128xf32> to vector<16x128xbf16>
    %cst_41 = arith.constant dense<0.000000e+00> : vector<16x256xf32>
    %70 = tpu.matmul %69, %68, %cst_41 {dimension_numbers = #tpu.dot_dimension_numbers<[1], [0], [0], [1], [0, 0, 1, 1], [], []>} : vector<16x128xbf16>, vector<128x256xbf16>, vector<16x256xf32> -> vector<16x256xf32>
    %71 = arith.addf %70, %58 : vector<16x256xf32>
    %72 = vector.extract_strided_slice %71 {offsets = [0, 0], sizes = [16, 128], strides = [1, 1]} : vector<16x256xf32> to vector<16x128xf32>
    %73 = vector.extract_strided_slice %71 {offsets = [0, 128], sizes = [16, 128], strides = [1, 1]} : vector<16x256xf32> to vector<16x128xf32>
    %74 = arith.addf %72, %73 : vector<16x128xf32>
    %c6_42 = arith.constant 6 : index
    %c0_43 = arith.constant 0 : index
    %75 = vector.load %arg2[%c6_42, %c0_43] : memref<8x256xf32, #tpu.memory_space<vmem>>, vector<1x64xf32>
    %c7 = arith.constant 7 : index
    %c0_44 = arith.constant 0 : index
    %76 = vector.load %arg2[%c7, %c0_44] : memref<8x256xf32, #tpu.memory_space<vmem>>, vector<1x64xf32>
    %77 = vector.broadcast %75 : vector<1x64xf32> to vector<16x64xf32>
    %78 = arith.mulf %1, %77 : vector<16x64xf32>
    %79 = vector.broadcast %76 : vector<1x64xf32> to vector<16x64xf32>
    %80 = arith.addf %78, %79 : vector<16x64xf32>
    %cst_45 = arith.constant 0.000000e+00 : f32
    %81 = vector.broadcast %cst_45 : f32 to vector<16x64xf32>
    %82 = arith.maximumf %80, %81 : vector<16x64xf32>
    %c7_46 = arith.constant 7 : index
    %c0_47 = arith.constant 0 : index
    %c0_48 = arith.constant 0 : index
    %83 = vector.load %arg3[%c7_46, %c0_47, %c0_48] : memref<8x256x256xbf16, #tpu.memory_space<vmem>>, vector<1x64x128xbf16>
    %84 = vector.shape_cast %83 : vector<1x64x128xbf16> to vector<64x128xbf16>
    %85 = arith.truncf %82 : vector<16x64xf32> to vector<16x64xbf16>
    %cst_49 = arith.constant dense<0.000000e+00> : vector<16x128xf32>
    %86 = tpu.matmul %85, %84, %cst_49 {dimension_numbers = #tpu.dot_dimension_numbers<[1], [0], [0], [1], [0, 0, 1, 1], [], []>} : vector<16x64xbf16>, vector<64x128xbf16>, vector<16x128xf32> -> vector<16x128xf32>
    %87 = arith.addf %86, %74 : vector<16x128xf32>
    %88 = vector.shape_cast %87 : vector<16x128xf32> to vector<1x16x128xf32>
    %c0_50 = arith.constant 0 : index
    %c0_51 = arith.constant 0 : index
    %c0_52 = arith.constant 0 : index
    %89 = vector.load %arg4[%c0_50, %c0_51, %c0_52] : memref<1x16x128xf32, #tpu.memory_space<vmem>>, vector<1x16x128xf32>
    tpu.vector_store %arg4[%c0_50, %c0_51, %c0_52], %88 {strides = array<i32>} : memref<1x16x128xf32, #tpu.memory_space<vmem>>, vector<1x16x128xf32>,
    return
  }
  func.func @transform_0(%arg0: i32) -> (i32, i32, i32) {
    %c0_i32 = arith.constant 0 : i32
    %c0_i32_0 = arith.constant 0 : i32
    %c0_i32_1 = arith.constant 0 : i32
    return %arg0, %c0_i32, %c0_i32_0 : i32, i32, i32
  }
  func.func @transform_1(%arg0: i32) -> (i32, i32) {
    %c0_i32 = arith.constant 0 : i32
    %c0_i32_0 = arith.constant 0 : i32
    %c0_i32_1 = arith.constant 0 : i32
    return %c0_i32, %c0_i32_0 : i32, i32
  }
  func.func @transform_2(%arg0: i32) -> (i32, i32, i32) {
    %c0_i32 = arith.constant 0 : i32
    %c0_i32_0 = arith.constant 0 : i32
    %c0_i32_1 = arith.constant 0 : i32
    %c0_i32_2 = arith.constant 0 : i32
    return %c0_i32, %c0_i32_0, %c0_i32_1 : i32, i32, i32
  }
  func.func @transform_3(%arg0: i32) -> (i32, i32, i32) {
    %c0_i32 = arith.constant 0 : i32
    %c0_i32_0 = arith.constant 0 : i32
    %c0_i32_1 = arith.constant 0 : i32
    return %arg0, %c0_i32, %c0_i32_0 : i32, i32, i32
  }
}

</mosaic_0001>

<bundles_post_ra>
// kernel: tpu_custom_call.1
= control target key start
LH: loop header
LB: loop body
LE: loop exit
PB: predicated region body
PF: predicated region fallthrough
CT: control target
= control target key end

     0   :  { %8 = vsyncpa [#allocation3], 0  ;;  %s2813_s0 = inlined_call_operand.hbm [shape: f32[2,16,64], index: 0, kind: input, shape index: {}]   ;;  %s2814_s1 = inlined_call_operand.hbm [shape: f32[8,256], index: 1, kind: input, shape index: {}]   ;;  %s2815_s2 = inlined_call_operand.hbm [shape: bf16[8,256,256], index: 2, kind: input, shape index: {}]   ;;  %s2816_s3 = inlined_call_operand.hbm [shape: f32[2,16,128], index: 3, kind: output, shape index: {}]  }
   0x1   :  { %10 = vsyncpa [#allocation3 + $0x1], 0 }
   0x2   :  { %11 = vsyncpa [#allocation6], 0 }
   0x3   :  { %12 = vsyncpa [#allocation4], 0 }
   0x4   :  { %14 = vsyncpa [#allocation4 + $0x1], 0  ;;  %s2537_s12 = smov 0   ;;  %s2539_s13 = smov 0  }
   0x5   :  { %s2541_s14 = smov 0   ;;  %s2543_s15 = smov 0  }
   0x6 LB: > { %s2558_s16 = sadd.s32 4294967295, %s2502_s15   ;;  %s1809_s17 = sadd.s32 4294967294, %s2502_s15   ;;  %s2502_s15 = sphi %s2543_s15, %s2843_s15   ;;  %s2498_s14 = sphi %s2541_s14, %s2842_s14   ;;  %s2494_s13 = sphi %s2539_s13, %s2841_s13   ;;  %s2490_s12 = sphi %s2537_s12, %s2840_s12  }
   0x7   : > { %s2562_s18 = sadd.s32 1, %s2502_s15   ;;  %s27_s19 = sadd.s32 1, %s2498_s14 }
   0x8   : > { %s24_s20 = ssub.s32 %s2502_s15, %s2562_s18  ;;  %p34_p0 = scmp.ne.s32.totalorder %s2498_s14, %s2494_s13 }
   0x9   : > { %p25_p1 = scmp.eq.s32.totalorder %s24_s20, 0  ;;  %p35_p2 = scmp.eq.s32.totalorder %s2502_s15, 0 }
   0xa   : > { %p40_p3 = scmp.ne.s32.totalorder %s2494_s13, %s2490_s12  ;;  %p2817_p4 = scmp.eq.s32.totalorder %s2558_s16, 0 }
   0xb   : > { %s2574_s21 = scalar_select %p25_p1, %s2498_s14, %s27_s19  }
   0xc   : > { %p2576_p5 = por %p35_p2, %p34_p0  ;;  %p2582_p6 = por %p2817_p4, %p40_p3 }
   0xd   : > { %p106_p7 = scmp.eq.s32.totalorder %s2558_s16, 1  ;;  %p112_p8 = scmp.eq.s32.totalorder %s1809_s17, 1 }
   0xe   : > { %s2822_s23 = scalar_select %p2582_p6, 1, 0 }
   0xf   : > { %p1810_p9 = scmp.ge.s32.totalorder %s2502_s15, 1  ;;  %p119_p10 = scmp.lt.s32.totalorder %s2502_s15, 3 }
  0x10   : > { %p2589_p11 = por %p106_p7, %p34_p0  ;;  %p2593_p12 = por %p112_p8, %p40_p3 }
  0x11   : > { %p2597_p13 = pnand %p1810_p9, %p119_p10  ;;  %s2504_s27 = smov [#allocation5]  }
  0x12   : > { %s2823_s24 = scalar_select %p2589_p11, 1, 0 }
  0x13   : > { %s2824_s25 = scalar_select %p2593_p12, 1, 0 }
  0x14   : > { %s2825_s26 = scalar_select %p2597_p13, 1, 0 }
  0x15   : > { %p2044_p2 = pneg %p2597_p13  ;;  %s132_s28 = sshll.u32 %s2504_s27, 4  ;;  %s133_s28 = int_to_ptr.vmem [resolvable:$true] %s132_s28 }
  0x16   : > { %p2061_p4 = scmp.lt.s32.totalorder %s2502_s15, 2  ;;  %p2826_p0 = scmp.eq.s32.totalorder %s2558_s16, 0 }
  0x17   : > { %s2505_s4 = smov [#allocation7]   ;;  %s2365_s6 = scalar_lea.vmem %s133_s28, 256 }
  0x18   : > { %p2607_p7 = pnand %p2044_p2, %p2826_p0  ;;  %p2613_p3 = pnand %p2061_p4, %p2576_p5 }
  0x19   : > { %s142_s5 = sshll.u32 %s2505_s4, 4  ;;  %p2366_p9 = scmp.ne.s32.totalorder %s133_s28, %s2365_s6  ;;  %s143_s5 = int_to_ptr.vmem [resolvable:$true] %s142_s5 }
  0x1a   : > { %p2356_p8 = pneg %p2607_p7  ;;  %p2373_p0 = scmp.lt.s32.totalorder %s133_s28, %s133_s28 }
  0x1b   : > { %p2374_p1 = scmp.lt.s32.totalorder %s2365_s6, %s2365_s6 }
  0x1c   : > { %p2368_p10 = pnand %p2366_p9, %p2356_p8 }
  0x1d   : > { %p2375_p12 = por %p2374_p1, %p2373_p0 }
  0x1e   : > { %p2369_p2 = pneg %p2368_p10 }
  0x20   : > { %p2376_p11 = pnand %p2375_p12, %p2369_p2 }
  0x22   : > { %2379 = shalt.err (!%p2376_p11)
}
  0x23   : > { %2047 = dma.hbm_to_vmem [thread:$0]  (!%p2607_p7), %s2814_s1, 256, %s133_s28, [#allocation6]  }
  0x24   : > { %s156_s9 = sand.u32 1, %s2498_s14   ;;  %s2391_s10 = scalar_lea.vmem %s143_s5, 32768 }
  0x25   : > { %p2392_p4 = scmp.ne.s32.totalorder %s143_s5, %s2391_s10  ;;  %p2399_p10 = scmp.lt.s32.totalorder %s143_s5, %s143_s5 }
  0x26   : > { %p2400_p6 = scmp.lt.s32.totalorder %s2391_s10, %s2391_s10 }
  0x27   : > { %p2394_p5 = pnand %p2392_p4, %p2356_p8 }
  0x28   : > { %p2401_p1 = por %p2400_p6, %p2399_p10 }
  0x29   : > { %p2395_p9 = pneg %p2394_p5 }
  0x2b   : > { %p2402_p12 = pnand %p2401_p1, %p2395_p9 }
  0x2d   : > { %2405 = shalt.err (!%p2402_p12)
}
  0x2e   : > { %s2506_s11 = smov 128   ;;  %s2507_s17 = smov 8  }
  0x2f   : > { %2050 = dma.hbm_to_vmem [thread:$0]  (!%p2607_p7), %s2815_s2, 32768, %s143_s5, [#allocation6], %s2506_s11, %s2506_s11, %s2507_s17  }
  0x30   : > { %s1814_s22 = sshll.u32 %s156_s9, 4  ;;  %s2013_s27 = sshll.u32 %s2502_s15, 8 }
  0x31   : > { %s2643_s6 = scalar_lea.hbm %s2813_s0, %s2013_s27  ;;  %s160_s7 = scalar_lea.vmem [#allocation2], %s1814_s22 }
  0x32   : > { %s167_s8 = sshll.u32 %s160_s7, 4  ;;  %s2647_s29 = scalar_lea.sflag [#allocation3], %s156_s9  ;;  %s2645_s8 = int_to_ptr.vmem [resolvable:$true] %s167_s8 }
  0x33   : > { %s2406_s10 = scalar_lea.hbm %s2643_s6, 256  ;;  %p2408_p11 = pneg %p2613_p3 }
  0x34   : > { %p2407_p6 = scmp.ne.s32.totalorder %s2643_s6, %s2406_s10  ;;  %s2411_s20 = scalar_lea.hbm %s2813_s0, 512 }
  0x35   : > { %p2412_p2 = scmp.lt.s32.totalorder %s2643_s6, %s2813_s0  ;;  %p2413_p0 = scmp.lt.s32.totalorder %s2411_s20, %s2406_s10 }
  0x36   : > { %p2409_p7 = pnand %p2408_p11, %p2407_p6 }
  0x37   : > { %p2414_p4 = por %p2413_p0, %p2412_p2 }
  0x38   : > { %p2410_p8 = pneg %p2409_p7 }
  0x3a   : > { %p2415_p5 = pnand %p2414_p4, %p2410_p8 }
  0x3c   : > { %2418 = shalt.err (!%p2415_p5)
}
  0x3d   : > { %s2419_s9 = scalar_lea.vmem %s2645_s8, 256  ;;  %s2508_s22 = smov [#allocation2]  }
  0x3e   : > { %p2420_p9 = scmp.ne.s32.totalorder %s2645_s8, %s2419_s9  ;;  %s2424_s4 = sshll.u32 %s2508_s22, 4  ;;  %s2425_s4 = int_to_ptr.vmem [resolvable:$false] %s2424_s4 }
  0x3f   : > { %s2426_s7 = scalar_lea.vmem %s2425_s4, 512  ;;  %p2427_p12 = scmp.lt.s32.totalorder %s2645_s8, %s2425_s4 }
  0x40   : > { %p2422_p10 = pnand %p2420_p9, %p2408_p11  ;;  %p2428_p6 = scmp.lt.s32.totalorder %s2426_s7, %s2419_s9 }
  0x42   : > { %p2423_p1 = pneg %p2422_p10  ;;  %p2429_p7 = por %p2428_p6, %p2427_p12 }
  0x44   : > { %p2430_p13 = pnand %p2429_p7, %p2423_p1 }
  0x46   : > { %2433 = shalt.err (!%p2430_p13)
}
  0x47   : > { %2054 = dma.hbm_to_vmem [thread:$0]  (!%p2613_p3), %s2643_s6, 256, %s2645_s8, %s2647_s29, %s2506_s11, %s2506_s11, %s2507_s17  }
  0x48   : > { %p2829_p11 = scmp.ne.s32.totalorder %s2825_s26, 0 }
  0x49   : > { %s2674_s10 = sand.u32 (!%p2829_p11), 1, %s2494_s13   ;;  %p2830_p13 = scmp.ne.s32.totalorder (!%p2829_p11), %s2822_s23, 0 }
  0x4a   : > { %179 = sbr.rel (%p2829_p11) target bundleno = 740 (0x2e4), region = 32  ;;  %s1818_s5 = sshll.u32 (!%p2829_p11), %s2674_s10, 4 }
  0x4b   : > { %s182_s19 = scalar_lea.sflag (!%p2829_p11), [#allocation3], %s2674_s10  ;;  %s2680_s30 = scalar_lea.vmem (!%p2829_p11), [#allocation2], %s1818_s5 }
  0x4f   : > { %2477 = dma.done.wait (%p2830_p13), %s182_s19, 256  }
  0x50   : > { %2479 = vsyncadd (%p2830_p13), %s182_s19, 4294967040  ;;  %p2831_p3 = scmp.eq.s32.totalorder %s2558_s16, 0 }
  0x52   : > { %2481 = dma.done.wait (%p2831_p3), [#allocation6], 33024   ;;  %p2832_p8 = pmov %p2831_p3 }
  0x53   : > { %v2691_v0 = vld [vmem:[%s2680_s30] sm:$0xff]  ;;  %v2509_v1 = vmov 0   ;;  %s2510_s26 = smov 64   ;;  %v2697_v2 = vld [vmem:[%s2680_s30 + $0x8] sm:$0xff]  ;;  %vm227_vm0 = vcmask 523264   ;;  %vm240_vm1 = vcmask 1040384  }
  0x54   : > { %2483 = vsyncadd (%p2832_p8), [#allocation6], 4294934272  ;;  %401 = vmatprep.mubr.bf16.mxu0 %v2509_v1  ;;  %524 = vmatprep.mubr.bf16.mxu1 %v2509_v1  ;;  %v2108_v3 = vld [vmem:[#allocation7 + $0x174] ss:$8 sps:$4 sm:$0xff]   ;;  %v2110_v4 = vld [vmem:[#allocation7 + $0x170] ss:$8 sps:$4 sm:$0xff]  }
  0x55   : > { %221 = vrot.lane.b32.xlu0 %v2691_v0, %s2510_s26  ;;  %v2111_v5 = vld [vmem:[#allocation7 + $0x164] ss:$8 sps:$4 sm:$0xff]   ;;  %369 = vmatprep.subr.bf16.mxu0 %v2108_v3  ;;  %v2113_v6 = vld [vmem:[#allocation7 + $0x74] ss:$8 sps:$4 sm:$0xff]   ;;  %v2115_v7 = vld [vmem:[#allocation7 + $0x160] ss:$8 sps:$4 sm:$0xff]  }
  0x56   : > { %370 = vmatpush1.bf16.msra.mxu0 %v2110_v4  ;;  %v2116_v8 = vld [vmem:[#allocation7 + $0x70] ss:$8 sps:$4 sm:$0xff]   ;;  %492 = vmatprep.subr.bf16.mxu1 %v2113_v6  ;;  %v2117_v9 = vld [vmem:[#allocation7 + $0x154] ss:$8 sps:$4 sm:$0xff]   ;;  %v2119_v10 = vld [vmem:[#allocation7 + $0x64] ss:$8 sps:$4 sm:$0xff]  }
  0x57   : > { %371 = vmatprep.subr.bf16.mxu0 %v2111_v5  ;;  %493 = vmatpush1.bf16.msra.mxu1 %v2116_v8  ;;  %v2122_v11 = vld [vmem:[#allocation7 + $0x60] ss:$8 sps:$4 sm:$0xff]   ;;  %v2121_v12 = vld [vmem:[#allocation7 + $0x150] ss:$8 sps:$4 sm:$0xff]   ;;  %v2125_v13 = vld [vmem:[#allocation7 + $0x54] ss:$8 sps:$4 sm:$0xff]  }
  0x58   : > { %494 = vmatprep.subr.bf16.mxu1 %v2119_v10  ;;  %v2123_v14 = vld [vmem:[#allocation7 + $0x144] ss:$8 sps:$4 sm:$0xff]   ;;  %v2128_v15 = vld [vmem:[#allocation7 + $0x50] ss:$8 sps:$4 sm:$0xff]   ;;  %v2127_v17 = vld [vmem:[#allocation7 + $0x140] ss:$8 sps:$4 sm:$0xff]  }
  0x59   : > { %223 = vrot.lane.b32.xlu0 %v2697_v2, %s2510_s26  ;;  %v2131_v16 = vld [vmem:[#allocation7 + $0x44] ss:$8 sps:$4 sm:$0xff]   ;;  %v2129_v18 = vld [vmem:[#allocation7 + $0x134] ss:$8 sps:$4 sm:$0xff]   ;;  %v2134_v19 = vld [vmem:[#allocation7 + $0x40] ss:$8 sps:$4 sm:$0xff]  }
  0x5a   : > { %372 = vmatpush1.bf16.msra.mxu0 %v2115_v7  ;;  %v2137_v20 = vld [vmem:[#allocation7 + $0x34] ss:$8 sps:$4 sm:$0xff]   ;;  %v2133_v21 = vld [vmem:[#allocation7 + $0x130] ss:$8 sps:$4 sm:$0xff]   ;;  %v2135_v22 = vld [vmem:[#allocation7 + $0x124] ss:$8 sps:$4 sm:$0xff]  }
  0x5b   : > { %373 = vmatprep.subr.bf16.mxu0 %v2117_v9  ;;  %495 = vmatpush1.bf16.msra.mxu1 %v2122_v11  ;;  %v2140_v23 = vld [vmem:[#allocation7 + $0x30] ss:$8 sps:$4 sm:$0xff]   ;;  %v2143_v24 = vld [vmem:[#allocation7 + $0x24] ss:$8 sps:$4 sm:$0xff]   ;;  %v2139_v25 = vld [vmem:[#allocation7 + $0x120] ss:$8 sps:$4 sm:$0xff]  }
  0x5c   : > { %496 = vmatprep.subr.bf16.mxu1 %v2125_v13  ;;  %v2141_v26 = vld [vmem:[#allocation7 + $0x114] ss:$8 sps:$4 sm:$0xff]   ;;  %v2146_v27 = vld [vmem:[#allocation7 + $0x20] ss:$8 sps:$4 sm:$0xff]   ;;  %v2145_v29 = vld [vmem:[#allocation7 + $0x110] ss:$8 sps:$4 sm:$0xff]  }
  0x5d   : > { %v2149_v28 = vld [vmem:[#allocation7 + $0x14] ss:$8 sps:$4 sm:$0xff]   ;;  %v2147_v30 = vld [vmem:[#allocation7 + $0x104] ss:$8 sps:$4 sm:$0xff]   ;;  %v2152_v31 = vld [vmem:[#allocation7 + $0x10] ss:$8 sps:$4 sm:$0xff]  }
  0x5e   : > { %374 = vmatpush1.bf16.msra.mxu0 %v2121_v12  ;;  %v2153_v32 = vld [vmem:[#allocation7 + $0x4] ss:$8 sps:$4 sm:$0xff]   ;;  %v2151_v33 = vld [vmem:[#allocation7 + $0x100] ss:$8 sps:$4 sm:$0xff]   ;;  %v2157_v34 = vld [vmem:[#allocation7 + $0x274] ss:$8 sps:$4 sm:$0xff]  }
  0x5f   : > { %375 = vmatprep.subr.bf16.mxu0 %v2123_v14  ;;  %497 = vmatpush1.bf16.msra.mxu1 %v2128_v15  ;;  %v2158_v35 = vld [vmem:[#allocation7] ss:$8 sps:$4 sm:$0xff]   ;;  %v2182_v36 = vld [vmem:[#allocation7 + $0x474] ss:$8 sps:$4 sm:$0xff]   ;;  %v230_v37 = vld [vmem:[#allocation5] ss:$0 sm:$0xff] }
  0x60   : > { %498 = vmatprep.subr.bf16.mxu1 %v2131_v16  ;;  %v1464_v38 = vld [vmem:[#allocation5 + $0x4] ss:$0 sm:$0xff]  ;;  %v231_v40 = vld [vmem:[#allocation5 + $0x1] ss:$0 sm:$0xff]  ;;  %v1465_v44 = vld [vmem:[#allocation5 + $0x5] ss:$0 sm:$0xff] }
  0x61   : > { %v2155_v57 = vld [vmem:[#allocation7 + $0x270] ss:$8 sps:$4 sm:$0xff]   ;;  %vm1854_vm2 = vmneg %vm240_vm1  ;;  %v2161_v62 = vld [vmem:[#allocation7 + $0x264] ss:$8 sps:$4 sm:$0xff]   ;;  %vm2511_vm3 = vmmov 1   ;;  %vm247_vm5 = vcmask 1046528  }
  0x62   : > { %376 = vmatpush1.bf16.msra.mxu0 %v2127_v17  ;;  %vm2717_vm4 = vmpackc.low %vm2511_vm3, %vm1854_vm2  ;;  %v2159_v4 = vld [vmem:[#allocation7 + $0x260] ss:$8 sps:$4 sm:$0xff]   ;;  %v2188_v5 = vld [vmem:[#allocation7 + $0x464] ss:$8 sps:$4 sm:$0xff]   ;;  %vm2513_vm7 = vmmov 0   ;;  %s215_s23 = scalar_lea.vmem [#allocation8], %s1818_s5 }
  0x63   : > { %377 = vmatprep.subr.bf16.mxu0 %v2129_v18  ;;  %499 = vmatpush1.bf16.msra.mxu1 %v2134_v19  ;;  %v2164_v6 = vld [vmem:[#allocation7 + $0x254] ss:$8 sps:$4 sm:$0xff]   ;;  %v2186_v7 = vld [vmem:[#allocation7 + $0x460] ss:$8 sps:$4 sm:$0xff]   ;;  %v2162_v8 = vld [vmem:[#allocation7 + $0x250] ss:$8 sps:$4 sm:$0xff]  }
  0x64   : > { %500 = vmatprep.subr.bf16.mxu1 %v2137_v20  ;;  %v2194_v9 = vld [vmem:[#allocation7 + $0x454] ss:$8 sps:$4 sm:$0xff]   ;;  %v2167_v10 = vld [vmem:[#allocation7 + $0x244] ss:$8 sps:$4 sm:$0xff]   ;;  %v2192_v11 = vld [vmem:[#allocation7 + $0x450] ss:$8 sps:$4 sm:$0xff]  }
  0x65   : > { %v2165_v12 = vld [vmem:[#allocation7 + $0x240] ss:$8 sps:$4 sm:$0xff]   ;;  %v2200_v13 = vld [vmem:[#allocation7 + $0x444] ss:$8 sps:$4 sm:$0xff]   ;;  %v2170_v14 = vld [vmem:[#allocation7 + $0x234] ss:$8 sps:$4 sm:$0xff]  }
  0x66   : > { %378 = vmatpush1.bf16.msra.mxu0 %v2133_v21  ;;  %v2198_v15 = vld [vmem:[#allocation7 + $0x440] ss:$8 sps:$4 sm:$0xff]   ;;  %v2168_v16 = vld [vmem:[#allocation7 + $0x230] ss:$8 sps:$4 sm:$0xff]   ;;  %v2173_v17 = vld [vmem:[#allocation7 + $0x224] ss:$8 sps:$4 sm:$0xff]  }
  0x67   : > { %379 = vmatprep.subr.bf16.mxu0 %v2135_v22  ;;  %501 = vmatpush1.bf16.msra.mxu1 %v2140_v23  ;;  %v2171_v18 = vld [vmem:[#allocation7 + $0x220] ss:$8 sps:$4 sm:$0xff]   ;;  %v2176_v19 = vld [vmem:[#allocation7 + $0x214] ss:$8 sps:$4 sm:$0xff]   ;;  %v2174_v20 = vld [vmem:[#allocation7 + $0x210] ss:$8 sps:$4 sm:$0xff]  }
  0x68   : > { %502 = vmatprep.subr.bf16.mxu1 %v2143_v24  ;;  %v2179_v21 = vld [vmem:[#allocation7 + $0x204] ss:$8 sps:$4 sm:$0xff]   ;;  %v2177_v24 = vld [vmem:[#allocation7 + $0x200] ss:$8 sps:$4 sm:$0xff]   ;;  %vm2729_vm6 = vmpackc.low %vm247_vm5, %vm2511_vm3  ;;  %s1717_s11 = sshll.u32 %s215_s23, 4  ;;  %s2014_s17 = sshll.u32 %s2558_s16, 8  ;;  %s2765_s11 = int_to_ptr.vmem [resolvable:$true] %s1717_s11 }
  0x69   : > { %s2770_s29 = scalar_lea.hbm %s2816_s3, %s2014_s17  ;;  %s1704_s20 = scalar_lea.sflag [#allocation4], %s2674_s10 }
  0x6a   : > { %380 = vmatpush1.bf16.msra.mxu0 %v2139_v25  ;;  %v2185_v25 = vld [vmem:[#allocation7 + $0x374] ss:$8 sps:$4 sm:$0xff]   ;;  %s2434_s27 = scalar_lea.vmem %s2765_s11, 256  ;;  %p2837_p0 = scmp.ne.s32.totalorder %s2823_s24, 0 }
  0x6b   : > { %381 = vmatprep.subr.bf16.mxu0 %v2141_v26  ;;  %503 = vmatpush1.bf16.msra.mxu1 %v2146_v27  ;;  %p2435_p2 = scmp.ne.s32.totalorder %s2765_s11, %s2434_s27  ;;  %s2514_s16 = smov [#allocation8]  }
  0x6c   : > { %504 = vmatprep.subr.bf16.mxu1 %v2149_v28  ;;  %v2183_v28 = vld [vmem:[#allocation7 + $0x370] ss:$8 sps:$4 sm:$0xff]   ;;  %s2438_s28 = sshll.u32 %s2514_s16, 4  ;;  %s2439_s28 = int_to_ptr.vmem [resolvable:$false] %s2438_s28 }
  0x6d   : > { %p2436_p4 = pnand %p2435_p2, %p2837_p0  ;;  %s2440_s9 = scalar_lea.vmem %s2439_s28, 512 }
  0x6e   : > { %382 = vmatpush1.bf16.msra.mxu0 %v2145_v29  ;;  %p2441_p9 = scmp.lt.s32.totalorder %s2765_s11, %s2439_s28  ;;  %p2442_p10 = scmp.lt.s32.totalorder %s2440_s9, %s2434_s27 }
  0x6f   : > { %383 = vmatprep.subr.bf16.mxu0 %v2147_v30  ;;  %505 = vmatpush1.bf16.msra.mxu1 %v2152_v31  ;;  %v2191_v30 = vld [vmem:[#allocation7 + $0x364] ss:$8 sps:$4 sm:$0xff]   ;;  %v2189_v31 = vld [vmem:[#allocation7 + $0x360] ss:$8 sps:$4 sm:$0xff]   ;;  %p2437_p5 = pneg %p2436_p4 }
  0x70   : > { %506 = vmatprep.subr.bf16.mxu1 %v2153_v32  ;;  %v2197_v32 = vld [vmem:[#allocation7 + $0x354] ss:$8 sps:$4 sm:$0xff]   ;;  %p2443_p1 = por %p2442_p10, %p2441_p9 }
  0x72   : > { %384 = vmatpush1.bf16.msra.mxu0 %v2151_v33  ;;  %v2195_v33 = vld [vmem:[#allocation7 + $0x350] ss:$8 sps:$4 sm:$0xff]   ;;  %p2444_p12 = pnand %p2443_p1, %p2437_p5 }
  0x73   : > { %633 = vmatprep.subr.bf16.mxu0 %v2157_v34  ;;  %507 = vmatpush1.bf16.msra.mxu1 %v2158_v35  ;;  %v2203_v34 = vld [vmem:[#allocation7 + $0x344] ss:$8 sps:$4 sm:$0xff]   ;;  %v2201_v35 = vld [vmem:[#allocation7 + $0x340] ss:$8 sps:$4 sm:$0xff]  }
  0x74   : > { %976 = vmatprep.subr.bf16.mxu1 %v2182_v36  ;;  %v2206_v36 = vld [vmem:[#allocation7 + $0x434] ss:$8 sps:$4 sm:$0xff]  }
  0xc7   : > { %v222_v39 = vpop.permute.xlu0 %221 }
  0xc8   : > { %v228_v41 = vsel %vm227_vm0, %v2691_v0, %v222_v39  ;;  %v2207_v39 = vld [vmem:[#allocation7 + $0x330] ss:$8 sps:$4 sm:$0xff]   ;;  %v2302_v0 = vld [vmem:[#allocation7 + $0x534] ss:$8 sps:$4 sm:$0xff]  }
  0xc9   : > { %v232_v42 = vmul.f32 %v230_v37, %v228_v41  ;;  %v1466_v43 = vmul.f32 %v1464_v38, %v228_v41  ;;  %v2210_v41 = vld [vmem:[#allocation7 + $0x420] ss:$8 sps:$4 sm:$0xff]  }
  0xcb   : > { %v234_v45 = vadd.f32 %v232_v42, %v231_v40  ;;  %v224_v46 = vpop.permute.xlu0 %223  ;;  %v1468_v48 = vadd.f32 %v1466_v43, %v1465_v44  ;;  %v2215_v42 = vld [vmem:[#allocation7 + $0x324] ss:$8 sps:$4 sm:$0xff]   ;;  %v2213_v43 = vld [vmem:[#allocation7 + $0x320] ss:$8 sps:$4 sm:$0xff]  }
  0xcc   : > { %v229_v47 = vsel %vm227_vm0, %v2697_v2, %v224_v46  ;;  %v2180_v2 = vld [vmem:[#allocation7 + $0x470] ss:$8 sps:$4 sm:$0xff]  }
  0xcd   : > { %v233_v49 = vmul.f32 %v230_v37, %v229_v47  ;;  %v1467_v50 = vmul.f32 %v1464_v38, %v229_v47  ;;  %v2704_v51 = vmax.f32 %v234_v45, 0.0  ;;  %v1470_v54 = vmax.f32 %v1468_v48, 0.0  ;;  %v2204_v37 = vld [vmem:[#allocation7 + $0x430] ss:$8 sps:$4 sm:$0xff]   ;;  %v2209_v38 = vld [vmem:[#allocation7 + $0x334] ss:$8 sps:$4 sm:$0xff]  }
  0xce   : > { %v2216_v45 = vld [vmem:[#allocation7 + $0x410] ss:$8 sps:$4 sm:$0xff]   ;;  %v2221_v47 = vld [vmem:[#allocation7 + $0x314] ss:$8 sps:$4 sm:$0xff]   ;;  %v2222_v48 = vld [vmem:[#allocation7 + $0x400] ss:$8 sps:$4 sm:$0xff]  }
  0xcf   : > { %v235_v52 = vadd.f32 %v233_v49, %v231_v40  ;;  %v1469_v53 = vadd.f32 %v1467_v50, %v1465_v44  ;;  %v241_v61 = vrot.slane %v2704_v51, 7  ;;  %v248_v23 = vrot.slane %v2704_v51, 1  ;;  %v2212_v40 = vld [vmem:[#allocation7 + $0x424] ss:$8 sps:$4 sm:$0xff]   ;;  %v2218_v44 = vld [vmem:[#allocation7 + $0x414] ss:$8 sps:$4 sm:$0xff]  }
  0xd0   : > { %v2219_v46 = vld [vmem:[#allocation7 + $0x310] ss:$8 sps:$4 sm:$0xff]   ;;  %v2224_v49 = vld [vmem:[#allocation7 + $0x404] ss:$8 sps:$4 sm:$0xff]  }
  0xd1   : > { %v2706_v55 = vmax.f32 %v235_v52, 0.0  ;;  %v1471_v56 = vmax.f32 %v1469_v53, 0.0  ;;  %v2227_v50 = vld [vmem:[#allocation7 + $0x304] ss:$8 sps:$4 sm:$0xff]   ;;  %v2225_v52 = vld [vmem:[#allocation7 + $0x300] ss:$8 sps:$4 sm:$0xff]  }
  0xd2   : > { %v2228_v53 = vld [vmem:[#allocation7 + $0x4f0] ss:$8 sps:$4 sm:$0xff]  }
  0xd3   : > { %v242_v58 = vrot.slane %v2706_v55, 7  ;;  %v2710_v59 = vpack.c.bf16 %v1471_v56, %v1470_v54  ;;  %v288_v60 = vpack.c.bf16 %v2706_v55, %v2704_v51  ;;  %v249_v22 = vrot.slane %v2706_v55, 1  ;;  %v2230_v51 = vld [vmem:[#allocation7 + $0x4f4] ss:$8 sps:$4 sm:$0xff]   ;;  %v2236_v55 = vld [vmem:[#allocation7 + $0x4e4] ss:$8 sps:$4 sm:$0xff]  }
  0xd4   : > { %v2233_v54 = vld [vmem:[#allocation7 + $0x3f4] ss:$8 sps:$4 sm:$0xff]   ;;  %v2231_v56 = vld [vmem:[#allocation7 + $0x3f0] ss:$8 sps:$4 sm:$0xff]  }
  0xd5   : > { %402 = vmatmul.mubr.bf16.vlgmr.msra.gmra.mxu0 %v288_v60  ;;  %v243_v63 = vsel %vm240_vm1, %v241_v61, %v242_v58  ;;  %v250_v26 = vsel %vm247_vm5, %v248_v23, %v249_v22  ;;  %v2239_v58 = vld [vmem:[#allocation7 + $0x3e4] ss:$8 sps:$4 sm:$0xff]   ;;  %v2242_v60 = vld [vmem:[#allocation7 + $0x4d4] ss:$8 sps:$4 sm:$0xff]  }
  0xd6   : > { %634 = vmatpush1.bf16.msra.mxu0 %v2155_v57  ;;  %v1856_v3 = vpack.c.bf16 %v243_v63, %v241_v61  ;;  %665 = vmatprep.mubr.bf16.mxu0 %v2509_v1  ;;  %v1875_v29 = vpack.c.bf16 %v249_v22, %v250_v26  ;;  %v2234_v57 = vld [vmem:[#allocation7 + $0x4e0] ss:$8 sps:$4 sm:$0xff]   ;;  %v2245_v63 = vld [vmem:[#allocation7 + $0x3d4] ss:$8 sps:$4 sm:$0xff]   ;;  %v685_v26 = vlaneseq }
  0xd7   : > { %635 = vmatprep.subr.bf16.mxu0 %v2161_v62  ;;  %v2237_v61 = vld [vmem:[#allocation7 + $0x3e0] ss:$8 sps:$4 sm:$0xff]   ;;  %v2240_v62 = vld [vmem:[#allocation7 + $0x4d0] ss:$8 sps:$4 sm:$0xff]   ;;  %v2278_v23 = vld [vmem:[#allocation7 + $0x574] ss:$8 sps:$4 sm:$0xff]  }
  0xd8   : > { %1857 = vmatmul.mubr.msk.bf16.vlgmr.msra.gmra.mxu1 %vm2717_vm4, %v1856_v3  ;;  %v2243_v3 = vld [vmem:[#allocation7 + $0x3d0] ss:$8 sps:$4 sm:$0xff]   ;;  %v2273_v22 = vld [vmem:[#allocation7 + $0x380] ss:$8 sps:$4 sm:$0xff]  }
  0xd9   : > { %977 = vmatpush1.bf16.msra.mxu1 %v2180_v2  ;;  %v2248_v2 = vld [vmem:[#allocation7 + $0x4c4] ss:$8 sps:$4 sm:$0xff]  }
  0xda   : > { %636 = vmatpush1.bf16.msra.mxu0 %v2159_v4  ;;  %978 = vmatprep.subr.bf16.mxu1 %v2188_v5  ;;  %v2246_v4 = vld [vmem:[#allocation7 + $0x4c0] ss:$8 sps:$4 sm:$0xff]   ;;  %v2251_v5 = vld [vmem:[#allocation7 + $0x3c4] ss:$8 sps:$4 sm:$0xff]  }
  0xdb   : > { %637 = vmatprep.subr.bf16.mxu0 %v2164_v6  ;;  %v2249_v6 = vld [vmem:[#allocation7 + $0x3c0] ss:$8 sps:$4 sm:$0xff]  }
  0xdd   : > { %979 = vmatpush1.bf16.msra.mxu1 %v2186_v7  ;;  %v2254_v7 = vld [vmem:[#allocation7 + $0x4b4] ss:$8 sps:$4 sm:$0xff]  }
  0xde   : > { %638 = vmatpush1.bf16.msra.mxu0 %v2162_v8  ;;  %980 = vmatprep.subr.bf16.mxu1 %v2194_v9  ;;  %v2252_v8 = vld [vmem:[#allocation7 + $0x4b0] ss:$8 sps:$4 sm:$0xff]   ;;  %v2257_v9 = vld [vmem:[#allocation7 + $0x3b4] ss:$8 sps:$4 sm:$0xff]  }
  0xdf   : > { %639 = vmatprep.subr.bf16.mxu0 %v2167_v10  ;;  %v2255_v10 = vld [vmem:[#allocation7 + $0x3b0] ss:$8 sps:$4 sm:$0xff]  }
  0xe1   : > { %981 = vmatpush1.bf16.msra.mxu1 %v2192_v11  ;;  %v2260_v11 = vld [vmem:[#allocation7 + $0x4a4] ss:$8 sps:$4 sm:$0xff]  }
  0xe2   : > { %640 = vmatpush1.bf16.msra.mxu0 %v2165_v12  ;;  %982 = vmatprep.subr.bf16.mxu1 %v2200_v13  ;;  %v2258_v12 = vld [vmem:[#allocation7 + $0x4a0] ss:$8 sps:$4 sm:$0xff]   ;;  %v2263_v13 = vld [vmem:[#allocation7 + $0x3a4] ss:$8 sps:$4 sm:$0xff]  }
  0xe3   : > { %641 = vmatprep.subr.bf16.mxu0 %v2170_v14  ;;  %v2261_v14 = vld [vmem:[#allocation7 + $0x3a0] ss:$8 sps:$4 sm:$0xff]  }
  0xe5   : > { %983 = vmatpush1.bf16.msra.mxu1 %v2198_v15  ;;  %v2266_v15 = vld [vmem:[#allocation7 + $0x494] ss:$8 sps:$4 sm:$0xff]  }
  0xe6   : > { %642 = vmatpush1.bf16.msra.mxu0 %v2168_v16  ;;  %984 = vmatprep.subr.bf16.mxu1 %v2206_v36  ;;  %v2264_v16 = vld [vmem:[#allocation7 + $0x490] ss:$8 sps:$4 sm:$0xff]  }
  0xe7   : > { %643 = vmatprep.subr.bf16.mxu0 %v2173_v17  ;;  %v2269_v17 = vld [vmem:[#allocation7 + $0x394] ss:$8 sps:$4 sm:$0xff]  }
  0xe9   : > { %985 = vmatpush1.bf16.msra.mxu1 %v2204_v37 }
  0xea   : > { %644 = vmatpush1.bf16.msra.mxu0 %v2171_v18  ;;  %986 = vmatprep.subr.bf16.mxu1 %v2212_v40  ;;  %v2267_v18 = vld [vmem:[#allocation7 + $0x390] ss:$8 sps:$4 sm:$0xff]  }
  0xeb   : > { %645 = vmatprep.subr.bf16.mxu0 %v2176_v19  ;;  %v2272_v19 = vld [vmem:[#allocation7 + $0x484] ss:$8 sps:$4 sm:$0xff]  }
  0xed   : > { %987 = vmatpush1.bf16.msra.mxu1 %v2210_v41 }
  0xee   : > { %646 = vmatpush1.bf16.msra.mxu0 %v2174_v20  ;;  %988 = vmatprep.subr.bf16.mxu1 %v2218_v44  ;;  %v2270_v20 = vld [vmem:[#allocation7 + $0x480] ss:$8 sps:$4 sm:$0xff]  }
  0xef   : > { %647 = vmatprep.subr.bf16.mxu0 %v2179_v21  ;;  %v2275_v21 = vld [vmem:[#allocation7 + $0x384] ss:$8 sps:$4 sm:$0xff]  }
  0xf1   : > { %989 = vmatpush1.bf16.msra.mxu1 %v2216_v45 }
  0xf2   : > { %648 = vmatpush1.bf16.msra.mxu0 %v2177_v24  ;;  %990 = vmatprep.subr.bf16.mxu1 %v2224_v49  ;;  %v2281_v24 = vld [vmem:[#allocation7 + $0x674] ss:$8 sps:$4 sm:$0xff]  }
  0xf3   : > { %1179 = vmatprep.subr.bf16.mxu0 %v2185_v25 }
  0xf5   : > { %1876 = vmatmul.mubr.msk.bf16.vlgmr.msra.gmra.mxu0 %vm2729_vm6, %v1875_v29  ;;  %991 = vmatpush1.bf16.msra.mxu1 %v2222_v48 }
  0xf6   : > { %1180 = vmatpush1.bf16.msra.mxu0 %v2183_v28  ;;  %992 = vmatprep.subr.bf16.mxu1 %v2230_v51 }
  0xf7   : > { %1181 = vmatprep.subr.bf16.mxu0 %v2191_v30  ;;  %v686_v30 = vshrl.u32 %v685_v26, 7  ;;  %v2290_v26 = vld [vmem:[#allocation7 + $0x554] ss:$8 sps:$4 sm:$0xff]  }
  0xf9   : > { %993 = vmatpush2.bf16.msra.mxu1 %v2228_v53 }
  0xfa   : > { %1182 = vmatpush1.bf16.msra.mxu0 %v2189_v31  ;;  %994 = vmatprep.subr.bf16.mxu1 %v2236_v55 }
  0xfb   : > { %1183 = vmatprep.subr.bf16.mxu0 %v2197_v32 }
  0xfd   : > { %995 = vmatpush2.bf16.msra.mxu1 %v2234_v57 }
  0xfe   : > { %1184 = vmatpush1.bf16.msra.mxu0 %v2195_v33  ;;  %996 = vmatprep.subr.bf16.mxu1 %v2242_v60  ;;  %v687_v33 = vsub.s32 0, %v686_v30 }
  0xff   : > { %1185 = vmatprep.subr.bf16.mxu0 %v2203_v34  ;;  %v681_v34 = vld [vmem:[#allocation5 + $0x2] ss:$8 sm:$0x3] }
 0x100   : > { %v688_v40 = vrot.slane %v681_v34, %v687_v33 }
 0x101   : > { %997 = vmatpush2.bf16.msra.mxu1 %v2240_v62 }
 0x102   : > { %1186 = vmatpush1.bf16.msra.mxu0 %v2201_v35  ;;  %998 = vmatprep.subr.bf16.mxu1 %v2248_v2  ;;  %v691_v35 = vsub.s32 1, %v686_v30  ;;  %v2293_v30 = vld [vmem:[#allocation7 + $0x654] ss:$8 sps:$4 sm:$0xff]  }
 0x103   : > { %1187 = vmatprep.subr.bf16.mxu0 %v2209_v38 }
 0x104   : > { %v692_v44 = vrot.slane %v681_v34, %v691_v35  ;;  %v2299_v34 = vld [vmem:[#allocation7 + $0x644] ss:$8 sps:$4 sm:$0xff]  }
 0x105   : > { %999 = vmatpush2.bf16.msra.mxu1 %v2246_v4 }
 0x106   : > { %1188 = vmatpush1.bf16.msra.mxu0 %v2207_v39  ;;  %1000 = vmatprep.subr.bf16.mxu1 %v2254_v7  ;;  %v683_v39 = vld [vmem:[#allocation5 + $0x3] ss:$8 sm:$0x3] }
 0x107   : > { %1189 = vmatprep.subr.bf16.mxu0 %v2215_v42  ;;  %v707_v51 = vrot.slane %v683_v39, %v691_v35  ;;  %v2297_v35 = vld [vmem:[#allocation7 + $0x640] ss:$8 sps:$4 sm:$0xff]  }
 0x109   : > { %1001 = vmatpush2.bf16.msra.mxu1 %v2252_v8 }
 0x10a   : > { %1190 = vmatpush1.bf16.msra.mxu0 %v2213_v43  ;;  %1002 = vmatprep.subr.bf16.mxu1 %v2260_v11 }
 0x10b   : > { %1191 = vmatprep.subr.bf16.mxu0 %v2221_v47 }
 0x10d   : > { %1003 = vmatpush2.bf16.msra.mxu1 %v2258_v12  ;;  %v2276_v12 = vld [vmem:[#allocation7 + $0x570] ss:$8 sps:$4 sm:$0xff]  }
 0x10e   : > { %1192 = vmatpush1.bf16.msra.mxu0 %v2219_v46  ;;  %1004 = vmatprep.subr.bf16.mxu1 %v2266_v15  ;;  %v703_v46 = vrot.slane %v683_v39, %v687_v33  ;;  %v2294_v33 = vld [vmem:[#allocation7 + $0x540] ss:$8 sps:$4 sm:$0xff]  }
 0x10f   : > { %1193 = vmatprep.subr.bf16.mxu0 %v2227_v50  ;;  %v2306_v39 = vld [vmem:[#allocation7 + $0x520] ss:$8 sps:$4 sm:$0xff]  }
 0x111   : > { %1005 = vmatpush2.bf16.msra.mxu1 %v2264_v16 }
 0x112   : > { %1194 = vmatpush1.bf16.msra.mxu0 %v2225_v52  ;;  %1006 = vmatprep.subr.bf16.mxu1 %v2272_v19  ;;  %v2284_v19 = vld [vmem:[#allocation7 + $0x564] ss:$8 sps:$4 sm:$0xff]  }
 0x113   : > { %1195 = vmatprep.subr.bf16.mxu0 %v2233_v54 }
 0x115   : > { %1007 = vmatpush2.bf16.msra.mxu1 %v2270_v20 }
 0x116   : > { %1196 = vmatpush2.bf16.msra.mxu0 %v2231_v56  ;;  %1417 = vmatprep.subr.bf16.mxu1 %v2278_v23 }
 0x117   : > { %1197 = vmatprep.subr.bf16.mxu0 %v2239_v58 }
 0x11a   : > { %1198 = vmatpush2.bf16.msra.mxu0 %v2237_v61 }
 0x11b   : > { %1199 = vmatprep.subr.bf16.mxu0 %v2245_v63 }
 0x11e   : > { %1200 = vmatpush2.bf16.msra.mxu0 %v2243_v3 }
 0x11f   : > { %1201 = vmatprep.subr.bf16.mxu0 %v2251_v5 }
 0x122   : > { %1202 = vmatpush2.bf16.msra.mxu0 %v2249_v6 }
 0x123   : > { %1203 = vmatprep.subr.bf16.mxu0 %v2257_v9 }
 0x126   : > { %1204 = vmatpush2.bf16.msra.mxu0 %v2255_v10 }
 0x127   : > { %1205 = vmatprep.subr.bf16.mxu0 %v2263_v13 }
 0x12a   : > { %1206 = vmatpush2.bf16.msra.mxu0 %v2261_v14 }
 0x12b   : > { %1207 = vmatprep.subr.bf16.mxu0 %v2269_v17 }
 0x12e   : > { %1208 = vmatpush2.bf16.msra.mxu0 %v2267_v18 }
 0x12f   : > { %1209 = vmatprep.subr.bf16.mxu0 %v2275_v21 }
 0x132   : > { %1210 = vmatpush2.bf16.msra.mxu0 %v2273_v22  ;;  %v2279_v22 = vld [vmem:[#allocation7 + $0x670] ss:$8 sps:$4 sm:$0xff]  }
 0x133   : > { %1570 = vmatprep.subr.bf16.mxu0 %v2281_v24  ;;  %v2282_v24 = vld [vmem:[#allocation7 + $0x560] ss:$8 sps:$4 sm:$0xff]  }
 0x195   : > { %v403_v25 = vpop.f32.mrf.mxu0 }
 0x197   : > { %v405_v28 = vpop.f32.mrf.mxu0 }
 0x198   : > { %v526_v29 = vpop.f32.mrf.mxu1 }
 0x199   : > { %v407_v31 = vpop.f32.mrf.mxu0  ;;  %v527_v38 = vadd.f32 %v526_v29, %v403_v25  ;;  %v2287_v25 = vld [vmem:[#allocation7 + $0x664] ss:$8 sps:$4 sm:$0xff]   ;;  %v2288_v29 = vld [vmem:[#allocation7 + $0x550] ss:$8 sps:$4 sm:$0xff]  }
 0x19a   : > { %v528_v32 = vpop.f32.mrf.mxu1 }
 0x19b   : > { %v409_v36 = vpop.f32.mrf.mxu0  ;;  %v529_v42 = vadd.f32 %v528_v32, %v405_v28  ;;  %v2285_v28 = vld [vmem:[#allocation7 + $0x660] ss:$8 sps:$4 sm:$0xff]   ;;  %v2291_v32 = vld [vmem:[#allocation7 + $0x650] ss:$8 sps:$4 sm:$0xff]  }
 0x19c   : > { %v530_v37 = vpop.f32.mrf.mxu1 }
 0x19d   : > { %v531_v48 = vadd.f32 %v530_v37, %v407_v31  ;;  %v2296_v31 = vld [vmem:[#allocation7 + $0x544] ss:$8 sps:$4 sm:$0xff]  }
 0x19e   : > { %v532_v45 = vpop.f32.mrf.mxu1  ;;  %v2308_v37 = vld [vmem:[#allocation7 + $0x524] ss:$8 sps:$4 sm:$0xff]  }
 0x19f   : > { %v533_v53 = vadd.f32 %v532_v45, %v409_v36  ;;  %v2300_v36 = vld [vmem:[#allocation7 + $0x530] ss:$8 sps:$4 sm:$0xff]   ;;  %v2320_v45 = vld [vmem:[#allocation7 + $0x504] ss:$8 sps:$4 sm:$0xff]  }
 0x1b5   : > { %v667_v41 = vpop.f32.mrf.mxu0 }
 0x1b6   : > { %v676_v43 = vadd.f32 %v667_v41, %v527_v38  ;;  %v2303_v38 = vld [vmem:[#allocation7 + $0x630] ss:$8 sps:$4 sm:$0xff]   ;;  %v2314_v41 = vld [vmem:[#allocation7 + $0x514] ss:$8 sps:$4 sm:$0xff]  }
 0x1b7   : > { %v669_v47 = vpop.f32.mrf.mxu0 }
 0x1b8   : > { %v695_v49 = vmul.f32 %v688_v40, %v676_v43  ;;  %v677_v50 = vadd.f32 %v669_v47, %v529_v42  ;;  %v2309_v42 = vld [vmem:[#allocation7 + $0x620] ss:$8 sps:$4 sm:$0xff]   ;;  %v2312_v43 = vld [vmem:[#allocation7 + $0x510] ss:$8 sps:$4 sm:$0xff]  }
 0x1b9   : > { %v671_v52 = vpop.f32.mrf.mxu0  ;;  %v2318_v47 = vld [vmem:[#allocation7 + $0x500] ss:$8 sps:$4 sm:$0xff]  }
 0x1ba   : > { %v696_v54 = vmul.f32 %v692_v44, %v677_v50  ;;  %v678_v55 = vadd.f32 %v671_v52, %v531_v48  ;;  %v710_v57 = vadd.f32 %v703_v46, %v695_v49  ;;  %v2323_v48 = vld [vmem:[#allocation7 + $0x604] ss:$8 sps:$4 sm:$0xff]   ;;  %v2326_v49 = vld [vmem:[#allocation7 + $0x5f4] ss:$8 sps:$4 sm:$0xff]   ;;  %v2321_v50 = vld [vmem:[#allocation7 + $0x600] ss:$8 sps:$4 sm:$0xff]  }
 0x1bb   : > { %v673_v56 = vpop.f32.mrf.mxu0  ;;  %v2329_v52 = vld [vmem:[#allocation7 + $0x5e4] ss:$8 sps:$4 sm:$0xff]  }
 0x1bc   : > { %v711_v58 = vadd.f32 %v707_v51, %v696_v54  ;;  %v697_v60 = vmul.f32 %v688_v40, %v678_v55  ;;  %v679_v61 = vadd.f32 %v673_v56, %v533_v53  ;;  %v2735_v2 = vmax.f32 %v710_v57, 0.0  ;;  %v2311_v40 = vld [vmem:[#allocation7 + $0x624] ss:$8 sps:$4 sm:$0xff]   ;;  %v1615_v53 = vld [vmem:[#allocation5 + $0x6] ss:$0 sm:$0xff] }
 0x1bd   : > { %v2339_v54 = vld [vmem:[#allocation7 + $0x730] ss:$8 sps:$4 sm:$0xff]   ;;  %v2327_v55 = vld [vmem:[#allocation7 + $0x5e0] ss:$8 sps:$4 sm:$0xff]   ;;  %v2512_v56 = vmov 0.0  }
 0x1be   : > { %v712_v62 = vadd.f32 %v703_v46, %v697_v60  ;;  %v698_v63 = vmul.f32 %v692_v44, %v679_v61  ;;  %v715_v3 = vmax.f32 %v711_v58, 0.0  ;;  %v722_v8 = vrot.slane %v2735_v2, 7  ;;  %v2317_v44 = vld [vmem:[#allocation7 + $0x614] ss:$8 sps:$4 sm:$0xff]   ;;  %v2315_v46 = vld [vmem:[#allocation7 + $0x610] ss:$8 sps:$4 sm:$0xff]  }
 0x1bf   : > { %v2332_v57 = vld [vmem:[#allocation7 + $0x5d4] ss:$8 sps:$4 sm:$0xff]  }
 0x1c0   : > { %v2737_v4 = vmax.f32 %v712_v62, 0.0  ;;  %v713_v5 = vadd.f32 %v707_v51, %v698_v63  ;;  %v737_v9 = vrot.slane %v715_v3, 1  ;;  %v723_v13 = vrot.slane %v715_v3, 7  ;;  %v2324_v51 = vld [vmem:[#allocation7 + $0x5f0] ss:$8 sps:$4 sm:$0xff]  }
 0x1c1   : > { %v2352_v58 = vld [vmem:[%s2680_s30] sm:$0xff]  ;;  %v2353_v61 = vld [vmem:[%s2680_s30 + $0x8] sm:$0xff] }
 0x1c2   : > { %v724_v6 = vrot.slane %v2737_v4, 7  ;;  %v717_v7 = vmax.f32 %v713_v5, 0.0  ;;  %v814_v15 = vpack.c.bf16 %v2737_v4, %v2735_v2  ;;  %v1617_v60 = vmul.f32 %v2352_v58, %v1615_v53  ;;  %v1616_v63 = vld [vmem:[#allocation5 + $0x7] ss:$0 sm:$0xff]  ;;  %v2330_v5 = vld [vmem:[#allocation7 + $0x5d0] ss:$8 sps:$4 sm:$0xff]  }
 0x1c3   : > { %v1618_v62 = vmul.f32 %v2353_v61, %v1615_v53 }
 0x1c4   : > { %v726_v10 = vrot.slane %v717_v7, 7  ;;  %v815_v11 = vpack.c.bf16 %v717_v7, %v715_v3  ;;  %v738_v14 = vrot.slane %v717_v7, 1  ;;  %v725_v16 = vsel %vm240_vm1, %v722_v8, %v724_v6  ;;  %v2343_v3 = vld [vmem:[#allocation7 + $0x720] ss:$8 sps:$4 sm:$0xff]   ;;  %v2335_v6 = vld [vmem:[#allocation7 + $0x5c4] ss:$8 sps:$4 sm:$0xff]  }
 0x1c5   : > { %v1947_v23 = vpack.c.bf16 %v725_v16, %v722_v8  ;;  %v1619_v7 = vadd.f32 %v1617_v60, %v1616_v63  ;;  %v1620_v8 = vadd.f32 %v1618_v62, %v1616_v63 }
 0x1c6   : > { %1008 = vmatprep.mubr.bf16.mxu1 %v815_v11  ;;  %v727_v17 = vsel %vm240_vm1, %v723_v13, %v726_v10  ;;  %v739_v18 = vsel %vm247_vm5, %v737_v9, %v738_v14  ;;  %v2347_v9 = vld [vmem:[#allocation7 + $0x710] ss:$8 sps:$4 sm:$0xff]   ;;  %v2333_v10 = vld [vmem:[#allocation7 + $0x5c0] ss:$8 sps:$4 sm:$0xff]   ;;  %v2338_v11 = vld [vmem:[#allocation7 + $0x5b4] ss:$8 sps:$4 sm:$0xff]  }
 0x1c7   : > { %1009 = vmatmul.mubr.bf16.vlgmr.msra.gmra.mxu1 %v814_v15  ;;  %v1943_v20 = vpack.c.bf16 %v727_v17, %v723_v13  ;;  %v1982_v21 = vpack.c.bf16 %v738_v14, %v739_v18  ;;  %v2351_v13 = vld [vmem:[#allocation7 + $0x700] ss:$8 sps:$4 sm:$0xff]   ;;  %v2336_v14 = vld [vmem:[#allocation7 + $0x5b0] ss:$8 sps:$4 sm:$0xff]   ;;  %v2342_v15 = vld [vmem:[#allocation7 + $0x5a4] ss:$8 sps:$4 sm:$0xff]  }
 0x1c8   : > { %1418 = vmatpush1.bf16.msra.mxu1 %v2276_v12  ;;  %v1622_v12 = vmax.f32 %v1620_v8, 0.0  ;;  %v2340_v17 = vld [vmem:[#allocation7 + $0x5a0] ss:$8 sps:$4 sm:$0xff]   ;;  %v2346_v18 = vld [vmem:[#allocation7 + $0x594] ss:$8 sps:$4 sm:$0xff]  }
 0x1c9   : > { %1944 = vmatprep.mubr.msk.bf16.mxu0 %vm2717_vm4, %v1943_v20  ;;  %1983 = vmatprep.mubr.msk.bf16.mxu1 %vm2729_vm6, %v1982_v21  ;;  %v2350_v20 = vld [vmem:[#allocation7 + $0x584] ss:$8 sps:$4 sm:$0xff]   ;;  %v735_v21 = vrot.slane %v2737_v4, 1 }
 0x1ca   : > { %1948 = vmatmul.mubr.msk.bf16.vlgmr.msra.gmra.mxu0 %vm2717_vm4, %v1947_v23  ;;  %1419 = vmatprep.subr.bf16.mxu1 %v2284_v19  ;;  %v2344_v19 = vld [vmem:[#allocation7 + $0x590] ss:$8 sps:$4 sm:$0xff]   ;;  %v2348_v23 = vld [vmem:[#allocation7 + $0x580] ss:$8 sps:$4 sm:$0xff]  }
 0x1cb   : > { %1571 = vmatpush1.bf16.msra.mxu0 %v2279_v22  ;;  %1602 = vmatprep.mubr.bf16.mxu0 %v2509_v1  ;;  %v2305_v1 = vld [vmem:[#allocation7 + $0x634] ss:$8 sps:$4 sm:$0xff]   ;;  %v734_v22 = vrot.slane %v2735_v2, 1 }
 0x1cc   : > { %1420 = vmatpush1.bf16.msra.mxu1 %v2282_v24  ;;  %1572 = vmatprep.subr.bf16.mxu0 %v2287_v25 }
 0x1cd   : > { %1421 = vmatprep.subr.bf16.mxu1 %v2290_v26  ;;  %v736_v24 = vsel %vm247_vm5, %v734_v22, %v735_v21 }
 0x1ce   : > { %v1985_v25 = vpack.c.bf16 %v735_v21, %v736_v24 }
 0x1cf   : > { %1573 = vmatpush1.bf16.msra.mxu0 %v2285_v28 }
 0x1d0   : > { %1422 = vmatpush1.bf16.msra.mxu1 %v2288_v29  ;;  %1574 = vmatprep.subr.bf16.mxu0 %v2293_v30 }
 0x1d1   : > { %1423 = vmatprep.subr.bf16.mxu1 %v2296_v31 }
 0x1d3   : > { %1575 = vmatpush1.bf16.msra.mxu0 %v2291_v32 }
 0x1d4   : > { %1424 = vmatpush1.bf16.msra.mxu1 %v2294_v33  ;;  %1576 = vmatprep.subr.bf16.mxu0 %v2299_v34 }
 0x1d5   : > { %1425 = vmatprep.subr.bf16.mxu1 %v2302_v0 }
 0x1d7   : > { %1577 = vmatpush1.bf16.msra.mxu0 %v2297_v35 }
 0x1d8   : > { %1426 = vmatpush1.bf16.msra.mxu1 %v2300_v36  ;;  %1578 = vmatprep.subr.bf16.mxu0 %v2305_v1 }
 0x1d9   : > { %1427 = vmatprep.subr.bf16.mxu1 %v2308_v37 }
 0x1db   : > { %1579 = vmatpush1.bf16.msra.mxu0 %v2303_v38 }
 0x1dc   : > { %1428 = vmatpush1.bf16.msra.mxu1 %v2306_v39  ;;  %1580 = vmatprep.subr.bf16.mxu0 %v2311_v40 }
 0x1dd   : > { %1429 = vmatprep.subr.bf16.mxu1 %v2314_v41 }
 0x1df   : > { %1581 = vmatpush1.bf16.msra.mxu0 %v2309_v42 }
 0x1e0   : > { %1430 = vmatpush1.bf16.msra.mxu1 %v2312_v43  ;;  %1582 = vmatprep.subr.bf16.mxu0 %v2317_v44 }
 0x1e1   : > { %1431 = vmatprep.subr.bf16.mxu1 %v2320_v45 }
 0x1e3   : > { %1583 = vmatpush1.bf16.msra.mxu0 %v2315_v46 }
 0x1e4   : > { %1432 = vmatpush1.bf16.msra.mxu1 %v2318_v47  ;;  %1584 = vmatprep.subr.bf16.mxu0 %v2323_v48 }
 0x1e5   : > { %1433 = vmatprep.subr.bf16.mxu1 %v2326_v49 }
 0x1e7   : > { %1585 = vmatpush1.bf16.msra.mxu0 %v2321_v50 }
 0x1e8   : > { %1434 = vmatpush2.bf16.msra.mxu1 %v2324_v51  ;;  %2020 = vmatprep.subr.bf16.mxu0 %v2512_v56 }
 0x1e9   : > { %1435 = vmatprep.subr.bf16.mxu1 %v2329_v52 }
 0x1ea   : > { %1603 = vmatmul.mubr.bf16.vlgmr.msra.gmra.mxu0 %v2710_v59  ;;  %v1621_v59 = vmax.f32 %v1619_v7, 0.0 }
 0x1eb   : > { %2021 = vmatpush3.bf16.msra.mxu0 %v2339_v54  ;;  %2028 = vmatprep.mubr.msk.bf16.mxu0 %vm2513_vm7, %v2512_v56 }
 0x1ec   : > { %1436 = vmatpush2.bf16.msra.mxu1 %v2327_v55  ;;  %2022 = vmatprep.subr.bf16.mxu0 %v2512_v56  ;;  %v1632_v16 = vpack.c.bf16 %v1622_v12, %v1621_v59 }
 0x1ed   : > { %1437 = vmatprep.subr.bf16.mxu1 %v2332_v57 }
 0x1ef   : > { %2023 = vmatpush3.bf16.msra.mxu0 %v2343_v3 }
 0x1f0   : > { %1438 = vmatpush2.bf16.msra.mxu1 %v2330_v5  ;;  %2024 = vmatprep.subr.bf16.mxu0 %v2512_v56 }
 0x1f1   : > { %1439 = vmatprep.subr.bf16.mxu1 %v2335_v6 }
 0x1f3   : > { %2025 = vmatpush3.bf16.msra.mxu0 %v2347_v9 }
 0x1f4   : > { %1440 = vmatpush2.bf16.msra.mxu1 %v2333_v10  ;;  %2026 = vmatprep.subr.bf16.mxu0 %v2512_v56 }
 0x1f5   : > { %1441 = vmatprep.subr.bf16.mxu1 %v2338_v11 }
 0x1f7   : > { %2027 = vmatpush3.bf16.msra.mxu0 %v2351_v13 }
 0x1f8   : > { %1442 = vmatpush2.bf16.msra.mxu1 %v2336_v14 }
 0x1f9   : > { %1443 = vmatprep.subr.bf16.mxu1 %v2342_v15 }
 0x1fa   : > { %2029 = vmatmul.mubr.msk.bf16.vlgmr.msra.gmra.mxu0 %vm227_vm0, %v1632_v16 }
 0x1fc   : > { %1444 = vmatpush2.bf16.msra.mxu1 %v2340_v17 }
 0x1fd   : > { %1445 = vmatprep.subr.bf16.mxu1 %v2346_v18 }
 0x200   : > { %1446 = vmatpush2.bf16.msra.mxu1 %v2344_v19 }
 0x201   : > { %1447 = vmatprep.subr.bf16.mxu1 %v2350_v20 }
 0x204   : > { %1448 = vmatpush2.bf16.msra.mxu1 %v2348_v23 }
 0x207   : > { %1986 = vmatmul.mubr.msk.bf16.vlgmr.msra.gmra.mxu1 %vm2729_vm6, %v1985_v25 }
 0x287   : > { %v1010_v34 = vpop.f32.mrf.mxu1 }
 0x289   : > { %v1012_v35 = vpop.f32.mrf.mxu1 }
 0x28a   : > { %v1213_v26 = vpop.f32.mrf.mxu0 }
 0x28b   : > { %v1014_v37 = vpop.f32.mrf.mxu1  ;;  %v1214_v39 = vadd.f32 %v1213_v26, %v1010_v34 }
 0x28c   : > { %v1215_v28 = vpop.f32.mrf.mxu0 }
 0x28d   : > { %v1016_v38 = vpop.f32.mrf.mxu1  ;;  %v1216_v40 = vadd.f32 %v1215_v28, %v1012_v35 }
 0x28e   : > { %v1217_v29 = vpop.f32.mrf.mxu0 }
 0x28f   : > { %v1218_v43 = vadd.f32 %v1217_v29, %v1014_v37 }
 0x290   : > { %v1219_v30 = vpop.f32.mrf.mxu0 }
 0x291   : > { %v1220_v46 = vadd.f32 %v1219_v30, %v1016_v38 }
 0x2aa   : > { %v1604_v31 = vpop.f32.mrf.mxu0 }
 0x2ac   : > { %v1606_v32 = vpop.f32.mrf.mxu0 }
 0x2ae   : > { %v1608_v33 = vpop.f32.mrf.mxu0 }
 0x2b0   : > { %v1610_v4 = vpop.f32.mrf.mxu0 }
 0x2ba   : > { %v1694_v2 = vpop.f32.mrf.mxu0 }
 0x2bc   : > { %v2030_v0 = vpop.f32.mrf.mxu0 }
 0x2be   : > { %v1697_v36 = vpop.f32.mrf.mxu0 }
 0x2c0   : > { %v2031_v1 = vpop.f32.mrf.mxu0 }
 0x2c7   : > { %v1451_v27 = vpop.f32.mrf.mxu1 }
 0x2c8   : > { %v1460_v41 = vadd.f32 %v1451_v27, %v1214_v39 }
 0x2c9   : > { %v1453_v42 = vpop.f32.mrf.mxu1 }
 0x2ca   : > { %v1461_v44 = vadd.f32 %v1453_v42, %v1216_v40  ;;  %v1605_v47 = vadd.f32 %v1604_v31, %v1460_v41 }
 0x2cb   : > { %v1455_v45 = vpop.f32.mrf.mxu1 }
 0x2cc   : > { %v1607_v48 = vadd.f32 %v1606_v32, %v1461_v44  ;;  %v1462_v49 = vadd.f32 %v1455_v45, %v1218_v43 }
 0x2cd   : > { %v1457_v50 = vpop.f32.mrf.mxu1 }
 0x2ce   : > { %v1613_v51 = vadd.f32 %v1607_v48, %v1605_v47  ;;  %v1463_v52 = vadd.f32 %v1457_v50, %v1220_v46  ;;  %v1609_v54 = vadd.f32 %v1608_v33, %v1462_v49 }
 0x2d0   : > { %v1695_v53 = vadd.f32 %v1694_v2, %v1613_v51  ;;  %v1611_v55 = vadd.f32 %v1610_v4, %v1463_v52 }
 0x2d2   : > { %1701 = vst [vmem:[%s215_s23] sm:$0xff] %v1695_v53  ;;  %v1614_v56 = vadd.f32 %v1611_v55, %v1609_v54 }
 0x2d4   : > { %v1698_v57 = vadd.f32 %v1697_v36, %v1614_v56 }
 0x2d6   : > { %1702 = vst [vmem:[%s215_s23 + $0x8] sm:$0xff] %v1698_v57 }
 0x2d7   : > { %2447 = shalt.err (!%p2444_p12)
}
 0x2d8   : > { %s2448_s22 = scalar_lea.hbm %s2770_s29, 256  ;;  %s2452_s5 = scalar_lea.hbm %s2816_s3, 512 }
 0x2d9   : > { %p2449_p6 = scmp.ne.s32.totalorder %s2770_s29, %s2448_s22  ;;  %p2453_p13 = scmp.lt.s32.totalorder %s2770_s29, %s2816_s3 }
 0x2da   : > { %p2454_p3 = scmp.lt.s32.totalorder %s2452_s5, %s2448_s22 }
 0x2db   : > { %p2450_p7 = pnand %p2449_p6, %p2837_p0 }
 0x2dc   : > { %p2455_p8 = por %p2454_p3, %p2453_p13 }
 0x2dd   : > { %p2451_p11 = pneg %p2450_p7 }
 0x2df   : > { %p2456_p2 = pnand %p2455_p8, %p2451_p11 }
 0x2e1   : > { %2459 = shalt.err (!%p2456_p2)
}
 0x2e2   : > { %s2515_s26 = smov 128   ;;  %s2516_s23 = smov 8  }
 0x2e3   : > { %2042 = dma.vmem_to_hbm [thread:$0]  (%p2837_p0), %s2765_s11, 256, %s2770_s29, %s1704_s20, %s2515_s26, %s2515_s26, %s2516_s23  }
 0x2e4 PF: > { %s1732_s17 = sand.u32 1, %s2490_s12   ;;  %p2838_p4 = scmp.ne.s32.totalorder %s2824_s25, 0 }
 0x2e5   : > { %p2839_p5 = scmp.ge.s32.totalorder %s2502_s15, 2  ;;  %s1733_s6 = scalar_lea.sflag [#allocation4], %s1732_s17 }
 0x2e7   : > { %p2056_p9 = pnand %p2839_p5, %p2838_p4 }
 0x2e9   : > { %p2057_p10 = pneg %p2056_p9 }
 0x2eb   : > { %2485 = dma.done.wait (%p2057_p10), %s1733_s6, 256  }
 0x2ec   : > { %2487 = vsyncadd (%p2057_p10), %s1733_s6, 4294967040  ;;  %p17_p1 = scmp.ge.s32.totalorder %s2562_s18, 4   ;;  %s2840_s12 = smov %s2494_s13 }
 0x2ed   : > { %s2841_s13 = smov %s2498_s14  ;;  %s2842_s14 = smov %s2574_s21 }
 0x2ee   : > { %s2843_s15 = smov %s2562_s18  ;;  %19 = sbr.rel (!%p17_p1) target bundleno = 6 (0x6), region = 94 }
 0x2f3   :  { %1738 = vsyncpa [#allocation3], 1 }
 0x2f4   :  { %1740 = vsyncpa [#allocation3 + $0x1], 1 }
 0x2f5   :  { %1741 = vsyncpa [#allocation6], 1 }
 0x2f6   :  { %1742 = vsyncpa [#allocation4], 1 }
 0x2f7   :  { %1744 = vsyncpa [#allocation4 + $0x1], 1 }

</bundles_post_ra>
